<compile_context>
chip_gen: v5e
topology: v5e:2x2
jax: 0.10.0
libtpu: 0.0.40
codegen_flags: <defaults>
</compile_context>

<pallas_src>
import numpy as np
import jax
import jax.numpy as jnp
from jax import lax
from jax.experimental import pallas as pl
from jax.experimental.pallas import tpu as pltpu

# ------------------------- problem sizes (small, deterministic) -------------------------
B = 2
C = 32            # dim
NUM_HEADS = 4
HEAD_DIM = C // NUM_HEADS
H = W = 8
N = H * W         # tokens
TASK_TOKENS = 128
SCALE = HEAD_DIM ** (-0.5)


# ------------------------- bicubic (align_corners=False) resize matrix ------------------
def bicubic_resize_matrix(in_size, out_size):
    """Row i contains PyTorch-style bicubic weights (A=-0.75, border clamp)."""
    A = -0.75

    def cub1(x):  # |x| <= 1
        return ((A + 2.0) * x - (A + 3.0)) * x * x + 1.0

    def cub2(x):  # 1 < |x| < 2
        return ((A * x - 5.0 * A) * x + 8.0 * A) * x - 4.0 * A

    R = np.zeros((out_size, in_size), dtype=np.float64)
    scale = in_size / out_size
    for i in range(out_size):
        in_x = (i + 0.5) * scale - 0.5
        i0 = int(np.floor(in_x))
        t = in_x - i0
        w = (cub2(t + 1.0), cub1(t), cub1(1.0 - t), cub2(2.0 - t))
        for j in range(4):
            idx = min(max(i0 - 1 + j, 0), in_size - 1)
            R[i, idx] += w[j]
    return R.astype(np.float32)


# ------------------------------------ Pallas kernel --------------------------------------
def make_attention_kernel(bpg, n, c, num_heads, head_dim, scale):
    """bpg = batch elements in the single grid step (the whole batch)."""
    assert num_heads % 2 == 0, "heads are processed in lane-packed pairs"

    def kernel(qhm_ref, xt_ref, wkvt_ref, wpt_ref, bprojt_ref, out_ref):
        # Fused K/V projection for the whole collapsed batch, computed transposed so the
        # result is lane-dense:  kv^T = Wkv^T @ x^T  ->  (2c, bpg*n) = (64, 128).
        kv_t = jnp.dot(wkvt_ref[...], xt_ref[...], preferred_element_type=jnp.float32)

        wp_t = wpt_ref[...]                                        # (c, c)  == Wproj^T
        bias_t = jnp.broadcast_to(bprojt_ref[...], (c, n)).astype(jnp.float32)  # hoisted

        out_cols = []
        for b in range(bpg):                  # static unroll (bpg == B, tiny)
            cols = slice(b * n, (b + 1) * n)  # per-batch token columns of kv^T
            o_t_blocks = []
            for ph in range(num_heads // 2):  # heads in lane-packed pairs
                h0, h1 = 2 * ph, 2 * ph + 1
                q0 = qhm_ref[h0]              # (n, d) head-major: no lane slicing of q
                q1 = qhm_ref[h1]
                # Head slices of kv^T are sublane-aligned row ranges (head_dim == 8);
                # only the per-batch column slice touches lanes.
                k0_t = kv_t[h0 * head_dim:(h0 + 1) * head_dim, cols]          # (d, n)
                k1_t = kv_t[h1 * head_dim:(h1 + 1) * head_dim, cols]
                v0_t = kv_t[c + h0 * head_dim:c + (h0 + 1) * head_dim, cols]  # (d, n)
                v1_t = kv_t[c + h1 * head_dim:c + (h1 + 1) * head_dim, cols]

                s0 = jnp.dot(q0, k0_t, preferred_element_type=jnp.float32)    # (n, n)
                s1 = jnp.dot(q1, k1_t, preferred_element_type=jnp.float32)
                # Pack the head pair lane-dense: (n, 2n) = (64, 128) -> one max + one exp pass.
                s = jnp.concatenate([s0, s1], axis=-1) * scale
                # Shared row-max over the pair is a valid stabilizer for each head's softmax
                # (the per-head sums below keep the normalization exact).
                p = jnp.exp(s - jnp.max(s, axis=-1, keepdims=True))
                p0 = p[:, :n]
                p1 = p[:, n:]
                p0 = p0 * pl.reciprocal(jnp.sum(p0, axis=-1, keepdims=True), approx=True)
                p1 = p1 * pl.reciprocal(jnp.sum(p1, axis=-1, keepdims=True), approx=True)
                # attn_drop: eval mode -> identity.
                # o_h^T = v_h^T @ p_h^T via a last-dim contraction (no transposes materialized).
                o_t_blocks.append(lax.dot_general(
                    v0_t, p0, (((1,), (1,)), ((), ())),
                    preferred_element_type=jnp.float32))                       # (d, n)
                o_t_blocks.append(lax.dot_general(
                    v1_t, p1, (((1,), (1,)), ((), ())),
                    preferred_element_type=jnp.float32))
            # Single fused output projection per batch element (MRF-friendly on v5e/v6e):
            # out^T = Wproj^T @ o^T + b^T, with o^T assembled by a cheap sublane concat.
            o_t = jnp.concatenate(o_t_blocks, axis=0)                          # (c, n)
            out_cols.append(
                jnp.dot(wp_t, o_t, preferred_element_type=jnp.float32) + bias_t)
            # proj_drop: eval mode -> identity.
        # One unmasked, lane-dense (c, bpg*n) = (32, 128) store.
        out_ref[...] = jnp.concatenate(out_cols, axis=-1)

    return kernel


def attention_layer(x, task_q, Wq, Wkv, Wproj, bproj, R):
    Bx, Nx, Cx = x.shape
    d = Cx // NUM_HEADS

    # Batch-invariant work hoisted out of the kernel: q projection of the shared task queries
    # + bicubic token resize (linear along tokens), presented head-major.
    qr = R @ (task_q @ Wq)                                   # (N, C)
    qr_hm = qr.reshape(Nx, NUM_HEADS, d).transpose(1, 0, 2)  # (H, N, d)

    # The kernel works in transposed orientation (channels on sublanes, tokens on lanes); these
    # transposes are free layout ops in the XLA wrapper, outside the kernel.
    x_t = x.reshape(Bx * Nx, Cx).T                           # (C, B*N) = (32, 128)
    wkv_t = Wkv.T                                            # (2C, C)
    wp_t = Wproj.T                                           # (C, C)
    bproj_t = bproj.reshape(Cx, 1)                           # (C, 1)

    kernel = make_attention_kernel(Bx, Nx, Cx, NUM_HEADS, d, SCALE)

    out_t = pl.pallas_call(
        kernel,
        out_shape=jax.ShapeDtypeStruct((Cx, Bx * Nx), jnp.float32),
        grid_spec=pltpu.PrefetchScalarGridSpec(
            num_scalar_prefetch=0,
            grid=(1,),                                       # one step: overhead-bound problem
            in_specs=[
                pl.BlockSpec((NUM_HEADS, Nx, d), lambda i: (0, 0, 0)),  # q (head-major)
                pl.BlockSpec((Cx, Bx * Nx), lambda i: (0, 0)),          # x^T
                pl.BlockSpec((2 * Cx, Cx), lambda i: (0, 0)),           # Wkv^T (fused)
                pl.BlockSpec((Cx, Cx), lambda i: (0, 0)),               # Wproj^T
                pl.BlockSpec((Cx, 1), lambda i: (0, 0)),                # proj bias^T
            ],
            out_specs=pl.BlockSpec((Cx, Bx * Nx), lambda i: (0, 0)),
        ),
        compiler_params=pltpu.CompilerParams(
            dimension_semantics=("arbitrary",)),
        cost_estimate=pl.CostEstimate(flops=2_500_000, transcendentals=33_000,
                                      bytes_accessed=52_000),
    )(qr_hm, x_t, wkv_t, wp_t, bproj_t)

    # Back to (B, N, C) outside the kernel.
    return out_t.reshape(Cx, Bx, Nx).transpose(1, 2, 0)


# ------------------------------- pure-JAX reference (check) ------------------------------
def reference(x, task_q, Wq, Wkv, Wproj, bproj, R):
    Bx, Nx, Cx = x.shape
    d = Cx // NUM_HEADS
    tq = jnp.broadcast_to(task_q[None], (Bx, TASK_TOKENS, Cx))
    q = (tq @ Wq).reshape(Bx, TASK_TOKENS, NUM_HEADS, d).transpose(0, 2, 1, 3)
    kv = (x @ Wkv).reshape(Bx, Nx, 2, NUM_HEADS, d).transpose(2, 0, 3, 1, 4)
    k, v = kv[0], kv[1]
    qr = jnp.einsum('nm,bhmd->bhnd', R, q)
    attn = jnp.einsum('bhnd,bhmd->bhnm', qr, k) * SCALE
    attn = jax.nn.softmax(attn, axis=-1)
    o = jnp.einsum('bhnm,bhmd->bhnd', attn, v).transpose(0, 2, 1, 3).reshape(Bx, Nx, Cx)
    return o @ Wproj + bproj


# --------------------------------------- main --------------------------------------------
if __name__ == "__main__":
    key = jax.random.PRNGKey(0)
    k_x, k_tq, k_q, k_kv, k_p, k_b = jax.random.split(key, 6)

    x = jax.random.normal(k_x, (B, N, C), dtype=jnp.float32)
    task_q = jax.random.normal(k_tq, (TASK_TOKENS, C), dtype=jnp.float32)       # nn.Parameter randn(1,128,dim)
    Wq = jax.random.normal(k_q, (C, C), dtype=jnp.float32) * 0.05               # q: Linear(dim, dim, bias=False)
    Wkv = jax.random.normal(k_kv, (C, 2 * C), dtype=jnp.float32) * 0.05         # kv: Linear(dim, 2*dim, bias=False)
    Wproj = jax.random.normal(k_p, (C, C), dtype=jnp.float32) * 0.05            # proj: Linear(dim, dim)
    bproj = (jax.random.normal(k_b, (1, C), dtype=jnp.float32) * 0.01)          # proj bias

    R = jnp.asarray(bicubic_resize_matrix(TASK_TOKENS, N))

    out = attention_layer(x, task_q, Wq, Wkv, Wproj, bproj, R)
    out = jax.block_until_ready(out)

    ref = jax.block_until_ready(reference(x, task_q, Wq, Wkv, Wproj, bproj, R))
    np.testing.assert_allclose(np.asarray(out), np.asarray(ref), rtol=1e-3, atol=1e-3)

    print("KERNEL_OK")
</pallas_src>

<mosaic_0001>
module attributes {stable_mosaic.version = 11 : i64} {
  func.func @kernel(%arg0: i32, %arg1: memref<4x64x8xf32, #tpu.memory_space<vmem>>, %arg2: memref<32x128xf32, #tpu.memory_space<vmem>>, %arg3: memref<64x32xf32, #tpu.memory_space<vmem>>, %arg4: memref<32x32xf32, #tpu.memory_space<vmem>>, %arg5: memref<32x1xf32, #tpu.memory_space<vmem>>, %arg6: memref<32x128xf32, #tpu.memory_space<vmem>>) attributes {dimension_semantics = [#tpu.dimension_semantics<arbitrary>], iteration_bounds = array<i64: 1>, scalar_prefetch = 0 : i64, scratch_operands = 0 : i64, tpu.core_type = #tpu.core_type<tc>, window_params = [{pipeline_mode = #tpu.pipeline_mode<synchronous>, transform_indices = @transform_0, window_bounds = array<i64: 4, 64, 8>}, {pipeline_mode = #tpu.pipeline_mode<synchronous>, transform_indices = @transform_1, window_bounds = array<i64: 32, 128>}, {pipeline_mode = #tpu.pipeline_mode<synchronous>, transform_indices = @transform_2, window_bounds = array<i64: 64, 32>}, {pipeline_mode = #tpu.pipeline_mode<synchronous>, transform_indices = @transform_3, window_bounds = array<i64: 32, 32>}, {pipeline_mode = #tpu.pipeline_mode<synchronous>, transform_indices = @transform_4, window_bounds = array<i64: 32, 1>}, {pipeline_mode = #tpu.pipeline_mode<synchronous>, transform_indices = @transform_5, window_bounds = array<i64: 32, 128>}]} {
    %c0 = arith.constant 0 : index
    %c0_0 = arith.constant 0 : index
    %0 = vector.load %arg3[%c0, %c0_0] : memref<64x32xf32, #tpu.memory_space<vmem>>, vector<64x32xf32>
    %c0_1 = arith.constant 0 : index
    %c0_2 = arith.constant 0 : index
    %1 = vector.load %arg2[%c0_1, %c0_2] : memref<32x128xf32, #tpu.memory_space<vmem>>, vector<32x128xf32>
    %cst = arith.constant dense<0.000000e+00> : vector<64x128xf32>
    %2 = tpu.matmul %0, %1, %cst {dimension_numbers = #tpu.dot_dimension_numbers<[1], [0], [0], [1], [0, 0, 1, 1], [], []>} : vector<64x32xf32>, vector<32x128xf32>, vector<64x128xf32> -> vector<64x128xf32>
    %c0_3 = arith.constant 0 : index
    %c0_4 = arith.constant 0 : index
    %3 = vector.load %arg4[%c0_3, %c0_4] : memref<32x32xf32, #tpu.memory_space<vmem>>, vector<32x32xf32>
    %c0_5 = arith.constant 0 : index
    %c0_6 = arith.constant 0 : index
    %4 = vector.load %arg5[%c0_5, %c0_6] : memref<32x1xf32, #tpu.memory_space<vmem>>, vector<32x1xf32>
    %5 = vector.shape_cast %4 : vector<32x1xf32> to vector<32x1xf32>
    %6 = vector.broadcast %5 : vector<32x1xf32> to vector<32x64xf32>
    %c0_7 = arith.constant 0 : index
    %c0_8 = arith.constant 0 : index
    %c0_9 = arith.constant 0 : index
    %7 = vector.load %arg1[%c0_7, %c0_8, %c0_9] : memref<4x64x8xf32, #tpu.memory_space<vmem>>, vector<1x64x8xf32>
    %8 = vector.shape_cast %7 : vector<1x64x8xf32> to vector<64x8xf32>
    %c1 = arith.constant 1 : index
    %c0_10 = arith.constant 0 : index
    %c0_11 = arith.constant 0 : index
    %9 = vector.load %arg1[%c1, %c0_10, %c0_11] : memref<4x64x8xf32, #tpu.memory_space<vmem>>, vector<1x64x8xf32>
    %10 = vector.shape_cast %9 : vector<1x64x8xf32> to vector<64x8xf32>
    %11 = vector.extract_strided_slice %2 {offsets = [0, 0], sizes = [8, 64], strides = [1, 1]} : vector<64x128xf32> to vector<8x64xf32>
    %12 = vector.extract_strided_slice %2 {offsets = [8, 0], sizes = [8, 64], strides = [1, 1]} : vector<64x128xf32> to vector<8x64xf32>
    %13 = vector.extract_strided_slice %2 {offsets = [32, 0], sizes = [8, 64], strides = [1, 1]} : vector<64x128xf32> to vector<8x64xf32>
    %14 = vector.extract_strided_slice %2 {offsets = [40, 0], sizes = [8, 64], strides = [1, 1]} : vector<64x128xf32> to vector<8x64xf32>
    %cst_12 = arith.constant dense<0.000000e+00> : vector<64x64xf32>
    %15 = tpu.matmul %8, %11, %cst_12 {dimension_numbers = #tpu.dot_dimension_numbers<[1], [0], [0], [1], [0, 0, 1, 1], [], []>} : vector<64x8xf32>, vector<8x64xf32>, vector<64x64xf32> -> vector<64x64xf32>
    %cst_13 = arith.constant dense<0.000000e+00> : vector<64x64xf32>
    %16 = tpu.matmul %10, %12, %cst_13 {dimension_numbers = #tpu.dot_dimension_numbers<[1], [0], [0], [1], [0, 0, 1, 1], [], []>} : vector<64x8xf32>, vector<8x64xf32>, vector<64x64xf32> -> vector<64x64xf32>
    %17 = tpu.concatenate %15, %16 in 1 : vector<64x64xf32>, vector<64x64xf32> -> vector<64x128xf32>
    %cst_14 = arith.constant 0.353553385 : f32
    %18 = vector.broadcast %cst_14 : f32 to vector<64x128xf32>
    %19 = arith.mulf %17, %18 : vector<64x128xf32>
    %cst_15 = arith.constant dense<0xFF800000> : vector<64xf32>
    %20 = vector.multi_reduction <maximumf>, %19, %cst_15 [1] : vector<64x128xf32> to vector<64xf32>
    %21 = vector.shape_cast %20 : vector<64xf32> to vector<64x1xf32>
    %22 = vector.broadcast %21 : vector<64x1xf32> to vector<64x128xf32>
    %23 = arith.subf %19, %22 : vector<64x128xf32>
    %24 = math.exp %23 : vector<64x128xf32>
    %25 = vector.extract_strided_slice %24 {offsets = [0, 0], sizes = [64, 64], strides = [1, 1]} : vector<64x128xf32> to vector<64x64xf32>
    %26 = vector.extract_strided_slice %24 {offsets = [0, 64], sizes = [64, 64], strides = [1, 1]} : vector<64x128xf32> to vector<64x64xf32>
    %cst_16 = arith.constant dense<0.000000e+00> : vector<64xf32>
    %27 = vector.multi_reduction <add>, %25, %cst_16 [1] : vector<64x64xf32> to vector<64xf32>
    %28 = vector.shape_cast %27 : vector<64xf32> to vector<64x1xf32>
    %29 = tpu.reciprocal %28 {approx = true} : vector<64x1xf32> -> vector<64x1xf32>
    %30 = vector.broadcast %29 : vector<64x1xf32> to vector<64x64xf32>
    %31 = arith.mulf %25, %30 : vector<64x64xf32>
    %cst_17 = arith.constant dense<0.000000e+00> : vector<64xf32>
    %32 = vector.multi_reduction <add>, %26, %cst_17 [1] : vector<64x64xf32> to vector<64xf32>
    %33 = vector.shape_cast %32 : vector<64xf32> to vector<64x1xf32>
    %34 = tpu.reciprocal %33 {approx = true} : vector<64x1xf32> -> vector<64x1xf32>
    %35 = vector.broadcast %34 : vector<64x1xf32> to vector<64x64xf32>
    %36 = arith.mulf %26, %35 : vector<64x64xf32>
    %cst_18 = arith.constant dense<0.000000e+00> : vector<8x64xf32>
    %37 = tpu.matmul %13, %31, %cst_18 {dimension_numbers = #tpu.dot_dimension_numbers<[1], [1], [0], [0], [0, 0, 1, 0], [], []>} : vector<8x64xf32>, vector<64x64xf32>, vector<8x64xf32> -> vector<8x64xf32>
    %cst_19 = arith.constant dense<0.000000e+00> : vector<8x64xf32>
    %38 = tpu.matmul %14, %36, %cst_19 {dimension_numbers = #tpu.dot_dimension_numbers<[1], [1], [0], [0], [0, 0, 1, 0], [], []>} : vector<8x64xf32>, vector<64x64xf32>, vector<8x64xf32> -> vector<8x64xf32>
    %c2 = arith.constant 2 : index
    %c0_20 = arith.constant 0 : index
    %c0_21 = arith.constant 0 : index
    %39 = vector.load %arg1[%c2, %c0_20, %c0_21] : memref<4x64x8xf32, #tpu.memory_space<vmem>>, vector<1x64x8xf32>
    %40 = vector.shape_cast %39 : vector<1x64x8xf32> to vector<64x8xf32>
    %c3 = arith.constant 3 : index
    %c0_22 = arith.constant 0 : index
    %c0_23 = arith.constant 0 : index
    %41 = vector.load %arg1[%c3, %c0_22, %c0_23] : memref<4x64x8xf32, #tpu.memory_space<vmem>>, vector<1x64x8xf32>
    %42 = vector.shape_cast %41 : vector<1x64x8xf32> to vector<64x8xf32>
    %43 = vector.extract_strided_slice %2 {offsets = [16, 0], sizes = [8, 64], strides = [1, 1]} : vector<64x128xf32> to vector<8x64xf32>
    %44 = vector.extract_strided_slice %2 {offsets = [24, 0], sizes = [8, 64], strides = [1, 1]} : vector<64x128xf32> to vector<8x64xf32>
    %45 = vector.extract_strided_slice %2 {offsets = [48, 0], sizes = [8, 64], strides = [1, 1]} : vector<64x128xf32> to vector<8x64xf32>
    %46 = vector.extract_strided_slice %2 {offsets = [56, 0], sizes = [8, 64], strides = [1, 1]} : vector<64x128xf32> to vector<8x64xf32>
    %cst_24 = arith.constant dense<0.000000e+00> : vector<64x64xf32>
    %47 = tpu.matmul %40, %43, %cst_24 {dimension_numbers = #tpu.dot_dimension_numbers<[1], [0], [0], [1], [0, 0, 1, 1], [], []>} : vector<64x8xf32>, vector<8x64xf32>, vector<64x64xf32> -> vector<64x64xf32>
    %cst_25 = arith.constant dense<0.000000e+00> : vector<64x64xf32>
    %48 = tpu.matmul %42, %44, %cst_25 {dimension_numbers = #tpu.dot_dimension_numbers<[1], [0], [0], [1], [0, 0, 1, 1], [], []>} : vector<64x8xf32>, vector<8x64xf32>, vector<64x64xf32> -> vector<64x64xf32>
    %49 = tpu.concatenate %47, %48 in 1 : vector<64x64xf32>, vector<64x64xf32> -> vector<64x128xf32>
    %cst_26 = arith.constant 0.353553385 : f32
    %50 = vector.broadcast %cst_26 : f32 to vector<64x128xf32>
    %51 = arith.mulf %49, %50 : vector<64x128xf32>
    %cst_27 = arith.constant dense<0xFF800000> : vector<64xf32>
    %52 = vector.multi_reduction <maximumf>, %51, %cst_27 [1] : vector<64x128xf32> to vector<64xf32>
    %53 = vector.shape_cast %52 : vector<64xf32> to vector<64x1xf32>
    %54 = vector.broadcast %53 : vector<64x1xf32> to vector<64x128xf32>
    %55 = arith.subf %51, %54 : vector<64x128xf32>
    %56 = math.exp %55 : vector<64x128xf32>
    %57 = vector.extract_strided_slice %56 {offsets = [0, 0], sizes = [64, 64], strides = [1, 1]} : vector<64x128xf32> to vector<64x64xf32>
    %58 = vector.extract_strided_slice %56 {offsets = [0, 64], sizes = [64, 64], strides = [1, 1]} : vector<64x128xf32> to vector<64x64xf32>
    %cst_28 = arith.constant dense<0.000000e+00> : vector<64xf32>
    %59 = vector.multi_reduction <add>, %57, %cst_28 [1] : vector<64x64xf32> to vector<64xf32>
    %60 = vector.shape_cast %59 : vector<64xf32> to vector<64x1xf32>
    %61 = tpu.reciprocal %60 {approx = true} : vector<64x1xf32> -> vector<64x1xf32>
    %62 = vector.broadcast %61 : vector<64x1xf32> to vector<64x64xf32>
    %63 = arith.mulf %57, %62 : vector<64x64xf32>
    %cst_29 = arith.constant dense<0.000000e+00> : vector<64xf32>
    %64 = vector.multi_reduction <add>, %58, %cst_29 [1] : vector<64x64xf32> to vector<64xf32>
    %65 = vector.shape_cast %64 : vector<64xf32> to vector<64x1xf32>
    %66 = tpu.reciprocal %65 {approx = true} : vector<64x1xf32> -> vector<64x1xf32>
    %67 = vector.broadcast %66 : vector<64x1xf32> to vector<64x64xf32>
    %68 = arith.mulf %58, %67 : vector<64x64xf32>
    %cst_30 = arith.constant dense<0.000000e+00> : vector<8x64xf32>
    %69 = tpu.matmul %45, %63, %cst_30 {dimension_numbers = #tpu.dot_dimension_numbers<[1], [1], [0], [0], [0, 0, 1, 0], [], []>} : vector<8x64xf32>, vector<64x64xf32>, vector<8x64xf32> -> vector<8x64xf32>
    %cst_31 = arith.constant dense<0.000000e+00> : vector<8x64xf32>
    %70 = tpu.matmul %46, %68, %cst_31 {dimension_numbers = #tpu.dot_dimension_numbers<[1], [1], [0], [0], [0, 0, 1, 0], [], []>} : vector<8x64xf32>, vector<64x64xf32>, vector<8x64xf32> -> vector<8x64xf32>
    %71 = tpu.concatenate %37, %38, %69, %70 in 0 : vector<8x64xf32>, vector<8x64xf32>, vector<8x64xf32>, vector<8x64xf32> -> vector<32x64xf32>
    %cst_32 = arith.constant dense<0.000000e+00> : vector<32x64xf32>
    %72 = tpu.matmul %3, %71, %cst_32 {dimension_numbers = #tpu.dot_dimension_numbers<[1], [0], [0], [1], [0, 0, 1, 1], [], []>} : vector<32x32xf32>, vector<32x64xf32>, vector<32x64xf32> -> vector<32x64xf32>
    %73 = arith.addf %72, %6 : vector<32x64xf32>
    %c0_33 = arith.constant 0 : index
    %c0_34 = arith.constant 0 : index
    %c0_35 = arith.constant 0 : index
    %74 = vector.load %arg1[%c0_33, %c0_34, %c0_35] : memref<4x64x8xf32, #tpu.memory_space<vmem>>, vector<1x64x8xf32>
    %75 = vector.shape_cast %74 : vector<1x64x8xf32> to vector<64x8xf32>
    %c1_36 = arith.constant 1 : index
    %c0_37 = arith.constant 0 : index
    %c0_38 = arith.constant 0 : index
    %76 = vector.load %arg1[%c1_36, %c0_37, %c0_38] : memref<4x64x8xf32, #tpu.memory_space<vmem>>, vector<1x64x8xf32>
    %77 = vector.shape_cast %76 : vector<1x64x8xf32> to vector<64x8xf32>
    %78 = vector.extract_strided_slice %2 {offsets = [0, 64], sizes = [8, 64], strides = [1, 1]} : vector<64x128xf32> to vector<8x64xf32>
    %79 = vector.extract_strided_slice %2 {offsets = [8, 64], sizes = [8, 64], strides = [1, 1]} : vector<64x128xf32> to vector<8x64xf32>
    %80 = vector.extract_strided_slice %2 {offsets = [32, 64], sizes = [8, 64], strides = [1, 1]} : vector<64x128xf32> to vector<8x64xf32>
    %81 = vector.extract_strided_slice %2 {offsets = [40, 64], sizes = [8, 64], strides = [1, 1]} : vector<64x128xf32> to vector<8x64xf32>
    %cst_39 = arith.constant dense<0.000000e+00> : vector<64x64xf32>
    %82 = tpu.matmul %75, %78, %cst_39 {dimension_numbers = #tpu.dot_dimension_numbers<[1], [0], [0], [1], [0, 0, 1, 1], [], []>} : vector<64x8xf32>, vector<8x64xf32>, vector<64x64xf32> -> vector<64x64xf32>
    %cst_40 = arith.constant dense<0.000000e+00> : vector<64x64xf32>
    %83 = tpu.matmul %77, %79, %cst_40 {dimension_numbers = #tpu.dot_dimension_numbers<[1], [0], [0], [1], [0, 0, 1, 1], [], []>} : vector<64x8xf32>, vector<8x64xf32>, vector<64x64xf32> -> vector<64x64xf32>
    %84 = tpu.concatenate %82, %83 in 1 : vector<64x64xf32>, vector<64x64xf32> -> vector<64x128xf32>
    %cst_41 = arith.constant 0.353553385 : f32
    %85 = vector.broadcast %cst_41 : f32 to vector<64x128xf32>
    %86 = arith.mulf %84, %85 : vector<64x128xf32>
    %cst_42 = arith.constant dense<0xFF800000> : vector<64xf32>
    %87 = vector.multi_reduction <maximumf>, %86, %cst_42 [1] : vector<64x128xf32> to vector<64xf32>
    %88 = vector.shape_cast %87 : vector<64xf32> to vector<64x1xf32>
    %89 = vector.broadcast %88 : vector<64x1xf32> to vector<64x128xf32>
    %90 = arith.subf %86, %89 : vector<64x128xf32>
    %91 = math.exp %90 : vector<64x128xf32>
    %92 = vector.extract_strided_slice %91 {offsets = [0, 0], sizes = [64, 64], strides = [1, 1]} : vector<64x128xf32> to vector<64x64xf32>
    %93 = vector.extract_strided_slice %91 {offsets = [0, 64], sizes = [64, 64], strides = [1, 1]} : vector<64x128xf32> to vector<64x64xf32>
    %cst_43 = arith.constant dense<0.000000e+00> : vector<64xf32>
    %94 = vector.multi_reduction <add>, %92, %cst_43 [1] : vector<64x64xf32> to vector<64xf32>
    %95 = vector.shape_cast %94 : vector<64xf32> to vector<64x1xf32>
    %96 = tpu.reciprocal %95 {approx = true} : vector<64x1xf32> -> vector<64x1xf32>
    %97 = vector.broadcast %96 : vector<64x1xf32> to vector<64x64xf32>
    %98 = arith.mulf %92, %97 : vector<64x64xf32>
    %cst_44 = arith.constant dense<0.000000e+00> : vector<64xf32>
    %99 = vector.multi_reduction <add>, %93, %cst_44 [1] : vector<64x64xf32> to vector<64xf32>
    %100 = vector.shape_cast %99 : vector<64xf32> to vector<64x1xf32>
    %101 = tpu.reciprocal %100 {approx = true} : vector<64x1xf32> -> vector<64x1xf32>
    %102 = vector.broadcast %101 : vector<64x1xf32> to vector<64x64xf32>
    %103 = arith.mulf %93, %102 : vector<64x64xf32>
    %cst_45 = arith.constant dense<0.000000e+00> : vector<8x64xf32>
    %104 = tpu.matmul %80, %98, %cst_45 {dimension_numbers = #tpu.dot_dimension_numbers<[1], [1], [0], [0], [0, 0, 1, 0], [], []>} : vector<8x64xf32>, vector<64x64xf32>, vector<8x64xf32> -> vector<8x64xf32>
    %cst_46 = arith.constant dense<0.000000e+00> : vector<8x64xf32>
    %105 = tpu.matmul %81, %103, %cst_46 {dimension_numbers = #tpu.dot_dimension_numbers<[1], [1], [0], [0], [0, 0, 1, 0], [], []>} : vector<8x64xf32>, vector<64x64xf32>, vector<8x64xf32> -> vector<8x64xf32>
    %c2_47 = arith.constant 2 : index
    %c0_48 = arith.constant 0 : index
    %c0_49 = arith.constant 0 : index
    %106 = vector.load %arg1[%c2_47, %c0_48, %c0_49] : memref<4x64x8xf32, #tpu.memory_space<vmem>>, vector<1x64x8xf32>
    %107 = vector.shape_cast %106 : vector<1x64x8xf32> to vector<64x8xf32>
    %c3_50 = arith.constant 3 : index
    %c0_51 = arith.constant 0 : index
    %c0_52 = arith.constant 0 : index
    %108 = vector.load %arg1[%c3_50, %c0_51, %c0_52] : memref<4x64x8xf32, #tpu.memory_space<vmem>>, vector<1x64x8xf32>
    %109 = vector.shape_cast %108 : vector<1x64x8xf32> to vector<64x8xf32>
    %110 = vector.extract_strided_slice %2 {offsets = [16, 64], sizes = [8, 64], strides = [1, 1]} : vector<64x128xf32> to vector<8x64xf32>
    %111 = vector.extract_strided_slice %2 {offsets = [24, 64], sizes = [8, 64], strides = [1, 1]} : vector<64x128xf32> to vector<8x64xf32>
    %112 = vector.extract_strided_slice %2 {offsets = [48, 64], sizes = [8, 64], strides = [1, 1]} : vector<64x128xf32> to vector<8x64xf32>
    %113 = vector.extract_strided_slice %2 {offsets = [56, 64], sizes = [8, 64], strides = [1, 1]} : vector<64x128xf32> to vector<8x64xf32>
    %cst_53 = arith.constant dense<0.000000e+00> : vector<64x64xf32>
    %114 = tpu.matmul %107, %110, %cst_53 {dimension_numbers = #tpu.dot_dimension_numbers<[1], [0], [0], [1], [0, 0, 1, 1], [], []>} : vector<64x8xf32>, vector<8x64xf32>, vector<64x64xf32> -> vector<64x64xf32>
    %cst_54 = arith.constant dense<0.000000e+00> : vector<64x64xf32>
    %115 = tpu.matmul %109, %111, %cst_54 {dimension_numbers = #tpu.dot_dimension_numbers<[1], [0], [0], [1], [0, 0, 1, 1], [], []>} : vector<64x8xf32>, vector<8x64xf32>, vector<64x64xf32> -> vector<64x64xf32>
    %116 = tpu.concatenate %114, %115 in 1 : vector<64x64xf32>, vector<64x64xf32> -> vector<64x128xf32>
    %cst_55 = arith.constant 0.353553385 : f32
    %117 = vector.broadcast %cst_55 : f32 to vector<64x128xf32>
    %118 = arith.mulf %116, %117 : vector<64x128xf32>
    %cst_56 = arith.constant dense<0xFF800000> : vector<64xf32>
    %119 = vector.multi_reduction <maximumf>, %118, %cst_56 [1] : vector<64x128xf32> to vector<64xf32>
    %120 = vector.shape_cast %119 : vector<64xf32> to vector<64x1xf32>
    %121 = vector.broadcast %120 : vector<64x1xf32> to vector<64x128xf32>
    %122 = arith.subf %118, %121 : vector<64x128xf32>
    %123 = math.exp %122 : vector<64x128xf32>
    %124 = vector.extract_strided_slice %123 {offsets = [0, 0], sizes = [64, 64], strides = [1, 1]} : vector<64x128xf32> to vector<64x64xf32>
    %125 = vector.extract_strided_slice %123 {offsets = [0, 64], sizes = [64, 64], strides = [1, 1]} : vector<64x128xf32> to vector<64x64xf32>
    %cst_57 = arith.constant dense<0.000000e+00> : vector<64xf32>
    %126 = vector.multi_reduction <add>, %124, %cst_57 [1] : vector<64x64xf32> to vector<64xf32>
    %127 = vector.shape_cast %126 : vector<64xf32> to vector<64x1xf32>
    %128 = tpu.reciprocal %127 {approx = true} : vector<64x1xf32> -> vector<64x1xf32>
    %129 = vector.broadcast %128 : vector<64x1xf32> to vector<64x64xf32>
    %130 = arith.mulf %124, %129 : vector<64x64xf32>
    %cst_58 = arith.constant dense<0.000000e+00> : vector<64xf32>
    %131 = vector.multi_reduction <add>, %125, %cst_58 [1] : vector<64x64xf32> to vector<64xf32>
    %132 = vector.shape_cast %131 : vector<64xf32> to vector<64x1xf32>
    %133 = tpu.reciprocal %132 {approx = true} : vector<64x1xf32> -> vector<64x1xf32>
    %134 = vector.broadcast %133 : vector<64x1xf32> to vector<64x64xf32>
    %135 = arith.mulf %125, %134 : vector<64x64xf32>
    %cst_59 = arith.constant dense<0.000000e+00> : vector<8x64xf32>
    %136 = tpu.matmul %112, %130, %cst_59 {dimension_numbers = #tpu.dot_dimension_numbers<[1], [1], [0], [0], [0, 0, 1, 0], [], []>} : vector<8x64xf32>, vector<64x64xf32>, vector<8x64xf32> -> vector<8x64xf32>
    %cst_60 = arith.constant dense<0.000000e+00> : vector<8x64xf32>
    %137 = tpu.matmul %113, %135, %cst_60 {dimension_numbers = #tpu.dot_dimension_numbers<[1], [1], [0], [0], [0, 0, 1, 0], [], []>} : vector<8x64xf32>, vector<64x64xf32>, vector<8x64xf32> -> vector<8x64xf32>
    %138 = tpu.concatenate %104, %105, %136, %137 in 0 : vector<8x64xf32>, vector<8x64xf32>, vector<8x64xf32>, vector<8x64xf32> -> vector<32x64xf32>
    %cst_61 = arith.constant dense<0.000000e+00> : vector<32x64xf32>
    %139 = tpu.matmul %3, %138, %cst_61 {dimension_numbers = #tpu.dot_dimension_numbers<[1], [0], [0], [1], [0, 0, 1, 1], [], []>} : vector<32x32xf32>, vector<32x64xf32>, vector<32x64xf32> -> vector<32x64xf32>
    %140 = arith.addf %139, %6 : vector<32x64xf32>
    %141 = tpu.concatenate %73, %140 in 1 : vector<32x64xf32>, vector<32x64xf32> -> vector<32x128xf32>
    %c0_62 = arith.constant 0 : index
    %c0_63 = arith.constant 0 : index
    %142 = vector.load %arg6[%c0_62, %c0_63] : memref<32x128xf32, #tpu.memory_space<vmem>>, vector<32x128xf32>
    tpu.vector_store %arg6[%c0_62, %c0_63], %141 {strides = array<i32>} : memref<32x128xf32, #tpu.memory_space<vmem>>, vector<32x128xf32>,
    return
  }
  func.func @transform_0(%arg0: i32) -> (i32, i32, i32) {
    %c0_i32 = arith.constant 0 : i32
    %c0_i32_0 = arith.constant 0 : i32
    %c0_i32_1 = arith.constant 0 : i32
    %c0_i32_2 = arith.constant 0 : i32
    return %c0_i32, %c0_i32_0, %c0_i32_1 : i32, i32, i32
  }
  func.func @transform_1(%arg0: i32) -> (i32, i32) {
    %c0_i32 = arith.constant 0 : i32
    %c0_i32_0 = arith.constant 0 : i32
    %c0_i32_1 = arith.constant 0 : i32
    return %c0_i32, %c0_i32_0 : i32, i32
  }
  func.func @transform_2(%arg0: i32) -> (i32, i32) {
    %c0_i32 = arith.constant 0 : i32
    %c0_i32_0 = arith.constant 0 : i32
    %c0_i32_1 = arith.constant 0 : i32
    return %c0_i32, %c0_i32_0 : i32, i32
  }
  func.func @transform_3(%arg0: i32) -> (i32, i32) {
    %c0_i32 = arith.constant 0 : i32
    %c0_i32_0 = arith.constant 0 : i32
    %c0_i32_1 = arith.constant 0 : i32
    return %c0_i32, %c0_i32_0 : i32, i32
  }
  func.func @transform_4(%arg0: i32) -> (i32, i32) {
    %c0_i32 = arith.constant 0 : i32
    %c0_i32_0 = arith.constant 0 : i32
    %c0_i32_1 = arith.constant 0 : i32
    return %c0_i32, %c0_i32_0 : i32, i32
  }
  func.func @transform_5(%arg0: i32) -> (i32, i32) {
    %c0_i32 = arith.constant 0 : i32
    %c0_i32_0 = arith.constant 0 : i32
    %c0_i32_1 = arith.constant 0 : i32
    return %c0_i32, %c0_i32_0 : i32, i32
  }
}

</mosaic_0001>

<bundles_post_ra>
// kernel: tpu_custom_call.1
= control target key start
LH: loop header
LB: loop body
LE: loop exit
PB: predicated region body
PF: predicated region fallthrough
CT: control target
= control target key end

     0   :  { %s3399_s0 = inlined_call_operand.vmem [shape: f32[4,64,8], index: 0, kind: input, shape index: {}]   ;;  %s3400_s1 = inlined_call_operand.vmem [shape: f32[32,128], index: 1, kind: input, shape index: {}]   ;;  %s3401_s2 = inlined_call_operand.vmem [shape: f32[64,32], index: 2, kind: input, shape index: {}]   ;;  %s3402_s3 = inlined_call_operand.vmem [shape: f32[32,32], index: 3, kind: input, shape index: {}]   ;;  %s3403_s4 = inlined_call_operand.vmem [shape: f32[32,1], index: 4, kind: input, shape index: {}]   ;;  %s3404_s5 = inlined_call_operand.hbm [shape: f32[32,128], index: 5, kind: output, shape index: {}]  }
   0x1   :  { %v32_v0 = vld [vmem:[%s3400_s1 + $0x18] sm:$0xff]  ;;  %v31_v1 = vld [vmem:[%s3400_s1 + $0x10] sm:$0xff]  ;;  %v30_v2 = vld [vmem:[%s3400_s1 + $0x8] sm:$0xff] }
   0x2   :  { %70 = vmatpush.msra.mxu0 %v32_v0 }
   0x3   :  { %10 = vsyncpa [#allocation3], 0  ;;  %v29_v3 = vld [vmem:[%s3400_s1] sm:$0xff]  ;;  %vm33_vm0 = vcmask 261120   ;;  %v22_v5 = vld [vmem:[%s3401_s2 + $0x8] sm:$0xff]  ;;  %vm144_vm1 = vcmask 64512  }
   0x4   :  { %71 = vmatpush.msra.mxu0 %v31_v1  ;;  %v21_v4 = vld [vmem:[%s3401_s2] sm:$0xff]  ;;  %v23_v6 = vld [vmem:[%s3401_s2 + $0x10] sm:$0xff]  ;;  %v24_v7 = vld [vmem:[%s3401_s2 + $0x18] sm:$0xff]  ;;  %s2399_s1 = smov 64   ;;  %vm307_vm2 = vcmask 523264   ;;  %s1948_s13 = sshll.u32 %s3404_s5, 4  ;;  %s1949_s13 = int_to_ptr.hbm [resolvable:$true] %s1948_s13 }
   0x5   :  { %v1968_v9 = vld [vmem:[%s3399_s0 + $0x40] sm:$0xff]  ;;  %v1969_v11 = vld [vmem:[%s3399_s0 + $0x48] sm:$0xff]  ;;  %v1970_v13 = vld [vmem:[%s3399_s0 + $0x50] sm:$0xff]  ;;  %s2402_s14 = smov 128   ;;  %s2403_s15 = smov 8  }
   0x6   :  { %72 = vmatpush.msra.mxu0 %v30_v2  ;;  %v1971_v15 = vld [vmem:[%s3399_s0 + $0x58] sm:$0xff]  ;;  %v1972_v16 = vld [vmem:[%s3399_s0 + $0x60] sm:$0xff]  ;;  %v1973_v17 = vld [vmem:[%s3399_s0 + $0x68] sm:$0xff] }
   0x7   :  { %v1974_v18 = vld [vmem:[%s3399_s0 + $0x70] sm:$0xff]  ;;  %v1975_v19 = vld [vmem:[%s3399_s0 + $0x78] sm:$0xff]  ;;  %v2018_v20 = vld [vmem:[%s3399_s0 + $0xc0] sm:$0xff] }
   0x8   :  { %73 = vmatpush.msra.mxu0 %v29_v3  ;;  %v127_v21 = vld [vmem:[%s3399_s0] sm:$0xff]  ;;  %v2019_v22 = vld [vmem:[%s3399_s0 + $0xc8] sm:$0xff]  ;;  %v2020_v24 = vld [vmem:[%s3399_s0 + $0xd0] sm:$0xff] }
   0x9   :  { %1960 = vmatmul.msk.f32.vlgmr.msra.gmra.mxu0 %vm33_vm0, %v21_v4  ;;  %v128_v23 = vld [vmem:[%s3399_s0 + $0x8] sm:$0xff]  ;;  %v129_v25 = vld [vmem:[%s3399_s0 + $0x10] sm:$0xff]  ;;  %v2021_v26 = vld [vmem:[%s3399_s0 + $0xd8] sm:$0xff] }
   0xa   :  { %v130_v27 = vld [vmem:[%s3399_s0 + $0x18] sm:$0xff]  ;;  %v2022_v28 = vld [vmem:[%s3399_s0 + $0xe0] sm:$0xff]  ;;  %v2023_v30 = vld [vmem:[%s3399_s0 + $0xe8] sm:$0xff] }
   0xb   :  { %v131_v29 = vld [vmem:[%s3399_s0 + $0x20] sm:$0xff]  ;;  %v132_v31 = vld [vmem:[%s3399_s0 + $0x28] sm:$0xff]  ;;  %v2024_v32 = vld [vmem:[%s3399_s0 + $0xf0] sm:$0xff] }
   0xc   :  { %v133_v33 = vld [vmem:[%s3399_s0 + $0x30] sm:$0xff]  ;;  %v2025_v34 = vld [vmem:[%s3399_s0 + $0xf8] sm:$0xff]  ;;  %v2010_v36 = vld [vmem:[%s3399_s0 + $0x80] sm:$0xff] }
   0xd   :  { %v134_v35 = vld [vmem:[%s3399_s0 + $0x38] sm:$0xff]  ;;  %v2011_v38 = vld [vmem:[%s3399_s0 + $0x88] sm:$0xff]  ;;  %v2012_v40 = vld [vmem:[%s3399_s0 + $0x90] sm:$0xff] }
   0xe   :  { %v2013_v42 = vld [vmem:[%s3399_s0 + $0x98] sm:$0xff]  ;;  %v2014_v44 = vld [vmem:[%s3399_s0 + $0xa0] sm:$0xff]  ;;  %v2015_v46 = vld [vmem:[%s3399_s0 + $0xa8] sm:$0xff] }
   0xf   :  { %v2016_v48 = vld [vmem:[%s3399_s0 + $0xb0] sm:$0xff]  ;;  %v2017_v55 = vld [vmem:[%s3399_s0 + $0xb8] sm:$0xff] }
  0x11   :  { %1961 = vmatmul.msk.f32.gmra.mxu0 %vm33_vm0, %v22_v5 }
  0x19   :  { %1962 = vmatmul.msk.f32.gmra.mxu0 %vm33_vm0, %v23_v6 }
  0x21   :  { %1963 = vmatmul.msk.f32.gmra.mxu0 %vm33_vm0, %v24_v7 }
  0x86   :  { %v2462_v8 = vpop.f32.mrf.mxu0 }
  0x87   :  { %184 = vmatpush.msra.mxu1 %v2462_v8 }
  0x88   :  { %1976 = vmatmul.msk.f32.vlgmr.msra.gmra.mxu1 %vm144_vm1, %v127_v21 }
  0x8e   :  { %v2468_v10 = vpop.f32.mrf.mxu0 }
  0x8f   :  { %249 = vmatpush.msra.mxu2 %v2468_v10 }
  0x90   :  { %1984 = vmatmul.msk.f32.vlgmr.msra.gmra.mxu2 %vm144_vm1, %v1968_v9  ;;  %1977 = vmatmul.msk.f32.gmra.mxu1 %vm144_vm1, %v128_v23 }
  0x96   :  { %v2475_v12 = vpop.f32.mrf.mxu0 }
  0x97   :  { %643 = vmatpush.msrb.mxu1 %v2475_v12 }
  0x98   :  { %1985 = vmatmul.msk.f32.gmra.mxu2 %vm144_vm1, %v1969_v11  ;;  %1978 = vmatmul.msk.f32.gmra.mxu1 %vm144_vm1, %v129_v25 }
  0x9e   :  { %v2482_v14 = vpop.f32.mrf.mxu0 }
  0x9f   :  { %708 = vmatpush.msrb.mxu2 %v2482_v14 }
  0xa0   :  { %1986 = vmatmul.msk.f32.gmra.mxu2 %vm144_vm1, %v1970_v13  ;;  %1979 = vmatmul.msk.f32.gmra.mxu1 %vm144_vm1, %v130_v27 }
  0xa8   :  { %1987 = vmatmul.msk.f32.gmra.mxu2 %vm144_vm1, %v1971_v15  ;;  %1980 = vmatmul.msk.f32.gmra.mxu1 %vm144_vm1, %v131_v29 }
  0xb0   :  { %1988 = vmatmul.msk.f32.gmra.mxu2 %vm144_vm1, %v1972_v16  ;;  %1981 = vmatmul.msk.f32.gmra.mxu1 %vm144_vm1, %v132_v31 }
  0xb8   :  { %1989 = vmatmul.msk.f32.gmra.mxu2 %vm144_vm1, %v1973_v17  ;;  %1982 = vmatmul.msk.f32.gmra.mxu1 %vm144_vm1, %v133_v33 }
  0xc0   :  { %1990 = vmatmul.msk.f32.gmra.mxu2 %vm144_vm1, %v1974_v18  ;;  %1983 = vmatmul.msk.f32.gmra.mxu1 %vm144_vm1, %v134_v35 }
  0xc8   :  { %1991 = vmatmul.msk.f32.gmra.mxu2 %vm144_vm1, %v1975_v19  ;;  %2026 = vmatmul.msk.f32.vlgmr.msrb.gmra.mxu1 %vm144_vm1, %v2010_v36 }
  0xd0   :  { %2034 = vmatmul.msk.f32.vlgmr.msrb.gmra.mxu2 %vm144_vm1, %v2018_v20  ;;  %2027 = vmatmul.msk.f32.gmra.mxu1 %vm144_vm1, %v2011_v38 }
  0xd8   :  { %2035 = vmatmul.msk.f32.gmra.mxu2 %vm144_vm1, %v2019_v22  ;;  %2028 = vmatmul.msk.f32.gmra.mxu1 %vm144_vm1, %v2012_v40 }
  0xe0   :  { %2036 = vmatmul.msk.f32.gmra.mxu2 %vm144_vm1, %v2020_v24  ;;  %2029 = vmatmul.msk.f32.gmra.mxu1 %vm144_vm1, %v2013_v42 }
  0xe8   :  { %2037 = vmatmul.msk.f32.gmra.mxu2 %vm144_vm1, %v2021_v26  ;;  %2030 = vmatmul.msk.f32.gmra.mxu1 %vm144_vm1, %v2014_v44 }
  0xf0   :  { %2038 = vmatmul.msk.f32.gmra.mxu2 %vm144_vm1, %v2022_v28  ;;  %2031 = vmatmul.msk.f32.gmra.mxu1 %vm144_vm1, %v2015_v46 }
  0xf8   :  { %2039 = vmatmul.msk.f32.gmra.mxu2 %vm144_vm1, %v2023_v30  ;;  %2032 = vmatmul.msk.f32.gmra.mxu1 %vm144_vm1, %v2016_v48 }
 0x100   :  { %2040 = vmatmul.msk.f32.gmra.mxu2 %vm144_vm1, %v2024_v32  ;;  %2033 = vmatmul.msk.f32.gmra.mxu1 %vm144_vm1, %v2017_v55 }
 0x105   :  { %v186_v51 = vpop.f32.mrf.mxu1 }
 0x108   :  { %2041 = vmatmul.msk.f32.gmra.mxu2 %vm144_vm1, %v2025_v34 }
 0x10d   :  { %v189_v53 = vpop.f32.mrf.mxu1 }
 0x113   :  { %v251_v37 = vpop.f32.mrf.mxu2 }
 0x114   :  { %283 = vrot.lane.b32.xlu0 %v251_v37, %s2399_s1 }
 0x115   :  { %v192_v57 = vpop.f32.mrf.mxu1 }
 0x11b   :  { %v254_v39 = vpop.f32.mrf.mxu2 }
 0x11c   :  { %285 = vrot.lane.b32.xlu1 %v254_v39, %s2399_s1 }
 0x11d   :  { %v195_v59 = vpop.f32.mrf.mxu1 }
 0x123   :  { %v257_v41 = vpop.f32.mrf.mxu2 }
 0x124   :  { %287 = vrot.lane.b32.xlu2 %v257_v41, %s2399_s1 }
 0x125   :  { %v198_v61 = vpop.f32.mrf.mxu1 }
 0x12b   :  { %v260_v43 = vpop.f32.mrf.mxu2 }
 0x12c   :  { %289 = vrot.lane.b32.xlu0 %v260_v43, %s2399_s1 }
 0x12d   :  { %v201_v63 = vpop.f32.mrf.mxu1 }
 0x133   :  { %v263_v45 = vpop.f32.mrf.mxu2 }
 0x134   :  { %291 = vrot.lane.b32.xlu2 %v263_v45, %s2399_s1 }
 0x135   :  { %v204_v2 = vpop.f32.mrf.mxu1 }
 0x13b   :  { %v266_v47 = vpop.f32.mrf.mxu2 }
 0x13c   :  { %293 = vrot.lane.b32.xlu1 %v266_v47, %s2399_s1 }
 0x13d   :  { %v207_v4 = vpop.f32.mrf.mxu1 }
 0x143   :  { %v269_v49 = vpop.f32.mrf.mxu2 }
 0x144   :  { %295 = vrot.lane.b32.xlu0 %v269_v49, %s2399_s1 }
 0x145   :  { %v645_v9 = vpop.f32.mrf.mxu1 }
 0x14b   :  { %v272_v50 = vpop.f32.mrf.mxu2 }
 0x14c   :  { %297 = vrot.lane.b32.xlu0 %v272_v50, %s2399_s1 }
 0x14d   :  { %v648_v18 = vpop.f32.mrf.mxu1 }
 0x153   :  { %v710_v52 = vpop.f32.mrf.mxu2 }
 0x154   :  { %742 = vrot.lane.b32.xlu0 %v710_v52, %s2399_s1 }
 0x155   :  { %v651_v26 = vpop.f32.mrf.mxu1 }
 0x15b   :  { %v713_v54 = vpop.f32.mrf.mxu2 }
 0x15c   :  { %744 = vrot.lane.b32.xlu2 %v713_v54, %s2399_s1 }
 0x15d   :  { %v654_v35 = vpop.f32.mrf.mxu1 }
 0x163   :  { %v716_v56 = vpop.f32.mrf.mxu2 }
 0x164   :  { %746 = vrot.lane.b32.xlu1 %v716_v56, %s2399_s1 }
 0x165   :  { %v657_v45 = vpop.f32.mrf.mxu1 }
 0x16b   :  { %v719_v58 = vpop.f32.mrf.mxu2 }
 0x16c   :  { %748 = vrot.lane.b32.xlu2 %v719_v58, %s2399_s1 }
 0x16d   :  { %v660_v46 = vpop.f32.mrf.mxu1 }
 0x173   :  { %v722_v60 = vpop.f32.mrf.mxu2 }
 0x174   :  { %750 = vrot.lane.b32.xlu0 %v722_v60, %s2399_s1 }
 0x175   :  { %v663_v50 = vpop.f32.mrf.mxu1 }
 0x17b   :  { %v725_v62 = vpop.f32.mrf.mxu2 }
 0x17c   :  { %752 = vrot.lane.b32.xlu1 %v725_v62, %s2399_s1 }
 0x17d   :  { %v666_v60 = vpop.f32.mrf.mxu1 }
 0x17e   :  { %v288_v15 = vpop.permute.xlu2 %287 }
 0x17f   :  { %v310_v17 = vsel %vm307_vm2, %v192_v57, %v288_v15 }
 0x180   :  { %v2627_v19 = vmul.f32 0.35355338, %v310_v17 }
 0x183   :  { %v728_v0 = vpop.f32.mrf.mxu2 }
 0x184   :  { %754 = vrot.lane.b32.xlu2 %v728_v0, %s2399_s1 }
 0x186   :  { %v284_v3 = vpop.permute.xlu0 %283 }
 0x187   :  { %v308_v5 = vsel %vm307_vm2, %v186_v51, %v284_v3 }
 0x188   :  { %v2619_v6 = vmul.f32 0.35355338, %v308_v5 }
 0x18b   :  { %v731_v1 = vpop.f32.mrf.mxu2 }
 0x18c   :  { %756 = vrot.lane.b32.xlu1 %v731_v1, %s2399_s1 }
 0x18e   :  { %v286_v16 = vpop.permute.xlu1 %285  ;;  %v292_v24 = vpop.permute.xlu2 %291 }
 0x18f   :  { %v309_v23 = vsel %vm307_vm2, %v189_v53, %v286_v16  ;;  %v312_v30 = vsel %vm307_vm2, %v198_v61, %v292_v24 }
 0x190   :  { %v317_v25 = vmul.f32 0.35355338, %v309_v23  ;;  %v2640_v32 = vmul.f32 0.35355338, %v312_v30 }
 0x19e   :  { %v290_v7 = vpop.permute.xlu0 %289  ;;  %324 = vmax.xlane.f32.xlu0 %v2619_v6 }
 0x19f   :  { %v311_v11 = vsel %vm307_vm2, %v195_v59, %v290_v7 }
 0x1a0   :  { %v2623_v13 = vmul.f32 0.35355338, %v311_v11 }
 0x1a6   :  { %330 = vmax.xlane.f32.xlu0 %v2623_v13 }
 0x1ad   :  { %328 = vmax.xlane.f32.xlu2 %v2627_v19 }
 0x1ae   :  { %v294_v20 = vpop.permute.xlu1 %293 }
 0x1af   :  { %v313_v21 = vsel %vm307_vm2, %v201_v63, %v294_v20 }
 0x1b0   :  { %v2631_v22 = vmul.f32 0.35355338, %v313_v21 }
 0x1b2   :  { %334 = vmax.xlane.f32.xlu0 %v2631_v22 }
 0x1b6   :  { %v296_v27 = vpop.permute.xlu0 %295  ;;  %326 = vmax.xlane.f32.xlu1 %v317_v25  ;;  %v745_v31 = vpop.permute.xlu2 %744 }
 0x1b7   :  { %v314_v28 = vsel %vm307_vm2, %v204_v2, %v296_v27  ;;  %v767_v33 = vsel %vm307_vm2, %v648_v18, %v745_v31 }
 0x1b8   :  { %v2636_v29 = vmul.f32 0.35355338, %v314_v28  ;;  %v2644_v36 = vmul.f32 0.35355338, %v767_v33 }
 0x1ba   :  { %336 = vmax.xlane.f32.xlu2 %v2636_v29 }
 0x1be   :  { %v298_v34 = vpop.permute.xlu0 %297  ;;  %332 = vmax.xlane.f32.xlu1 %v2640_v32 }
 0x1bf   :  { %v315_v37 = vsel %vm307_vm2, %v207_v4, %v298_v34 }
 0x1c0   :  { %v2648_v38 = vmul.f32 0.35355338, %v315_v37 }
 0x1c2   :  { %784 = vmax.xlane.f32.xlu2 %v2644_v36 }
 0x1c6   :  { %v743_v39 = vpop.permute.xlu0 %742  ;;  %v749_v40 = vpop.permute.xlu2 %748  ;;  %338 = vmax.xlane.f32.xlu1 %v2648_v38 }
 0x1c7   :  { %v766_v41 = vsel %vm307_vm2, %v645_v9, %v743_v39  ;;  %v769_v42 = vsel %vm307_vm2, %v654_v35, %v749_v40 }
 0x1c8   :  { %v2653_v43 = vmul.f32 0.35355338, %v766_v41  ;;  %v2655_v44 = vmul.f32 0.35355338, %v769_v42 }
 0x1ca   :  { %782 = vmax.xlane.f32.xlu0 %v2653_v43  ;;  %788 = vmax.xlane.f32.xlu2 %v2655_v44 }
 0x1d6   :  { %v747_v47 = vpop.permute.xlu1 %746 }
 0x1d7   :  { %v768_v48 = vsel %vm307_vm2, %v651_v26, %v747_v47 }
 0x1d8   :  { %v2660_v49 = vmul.f32 0.35355338, %v768_v48 }
 0x1da   :  { %786 = vmax.xlane.f32.xlu1 %v2660_v49 }
 0x1de   :  { %v755_v51 = vpop.permute.xlu2 %754 }
 0x1df   :  { %v772_v52 = vsel %vm307_vm2, %v663_v50, %v755_v51 }
 0x1e0   :  { %v2664_v53 = vmul.f32 0.35355338, %v772_v52 }
 0x1e2   :  { %794 = vmax.xlane.f32.xlu2 %v2664_v53 }
 0x1e6   :  { %v751_v54 = vpop.permute.xlu0 %750 }
 0x1e7   :  { %v770_v55 = vsel %vm307_vm2, %v657_v45, %v751_v54 }
 0x1e8   :  { %v2668_v56 = vmul.f32 0.35355338, %v770_v55 }
 0x1ea   :  { %790 = vmax.xlane.f32.xlu0 %v2668_v56 }
 0x1ee   :  { %v753_v57 = vpop.permute.xlu1 %752 }
 0x1ef   :  { %v771_v58 = vsel %vm307_vm2, %v660_v46, %v753_v57 }
 0x1f0   :  { %v2672_v59 = vmul.f32 0.35355338, %v771_v58 }
 0x1f2   :  { %792 = vmax.xlane.f32.xlu1 %v2672_v59 }
 0x1fe   :  { %v757_v61 = vpop.permute.xlu1 %756 }
 0x1ff   :  { %v773_v62 = vsel %vm307_vm2, %v666_v60, %v757_v61 }
 0x200   :  { %v2676_v63 = vmul.f32 0.35355338, %v773_v62 }
 0x202   :  { %796 = vmax.xlane.f32.xlu2 %v2676_v63 }
 0x211   :  { %v325_v0 = vpop.xlane.xlu0 %324 }
 0x212   :  { %v340_v1 = vsub.f32 %v2619_v6, %v325_v0 }
 0x214   :  { %v348_v2 = vmul.f32 1.442695, %v340_v1 }
 0x216   :  { %2145 = vpow2.f32 %v348_v2 }
 0x219   :  { %v331_v21 = vpop.xlane.xlu0 %330 }
 0x21a   :  { %v343_v26 = vsub.f32 %v2623_v13, %v331_v21 }
 0x21c   :  { %v2680_v3 = vpop.eup %2145  ;;  %v354_v28 = vmul.f32 1.442695, %v343_v26 }
 0x21d   :  { %412 = vrot.lane.b32.xlu1 %v2680_v3, %s2399_s1  ;;  %v364_v18 = vsel %vm307_vm2, %v2680_v3, 0.0 }
 0x220   :  { %v329_v6 = vpop.xlane.xlu2 %328 }
 0x221   :  { %v342_v15 = vsub.f32 %v2627_v19, %v329_v6 }
 0x223   :  { %v352_v17 = vmul.f32 1.442695, %v342_v15 }
 0x229   :  { %v327_v4 = vpop.xlane.xlu1 %326 }
 0x22a   :  { %v341_v5 = vsub.f32 %v317_v25, %v327_v4 }
 0x22c   :  { %v350_v7 = vmul.f32 1.442695, %v341_v5 }
 0x22d   :  { %v337_v16 = vpop.xlane.xlu2 %336 }
 0x22e   :  { %2147 = vpow2.f32 %v350_v7  ;;  %v346_v20 = vsub.f32 %v2636_v29, %v337_v16 }
 0x22f   :  { %2149 = vpow2.f32 %v352_v17 }
 0x230   :  { %v360_v25 = vmul.f32 1.442695, %v346_v20 }
 0x231   :  { %v333_v30 = vpop.xlane.xlu1 %332 }
 0x232   :  { %2151 = vpow2.f32 %v360_v25  ;;  %v344_v42 = vsub.f32 %v2640_v32, %v333_v30 }
 0x233   :  { %2153 = vpow2.f32 %v354_v28 }
 0x234   :  { %v2684_v9 = vpop.eup %2147  ;;  %v356_v47 = vmul.f32 1.442695, %v344_v42 }
 0x235   :  { %414 = vrot.lane.b32.xlu0 %v2684_v9, %s2399_s1  ;;  %v367_v11 = vsel %vm307_vm2, %v2684_v9, 0.0  ;;  %v785_v23 = vpop.xlane.xlu2 %784  ;;  %v2694_v24 = vpop.eup %2149 }
 0x236   :  { %368 = vadd.xlane.f32.xlu2 %v367_v11  ;;  %v370_v19 = vsel %vm307_vm2, %v2694_v24, 0.0  ;;  %v799_v27 = vsub.f32 %v2644_v36, %v785_v23  ;;  %v335_v36 = vpop.xlane.xlu0 %334 }
 0x237   :  { %v345_v4 = vsub.f32 %v2631_v22, %v335_v36 }
 0x238   :  { %v808_v29 = vmul.f32 1.442695, %v799_v27  ;;  %v2702_v33 = vpop.eup %2151 }
 0x239   :  { %v2707_v34 = vpop.eup %2153  ;;  %v339_v39 = vpop.xlane.xlu1 %338  ;;  %v358_v11 = vmul.f32 1.442695, %v345_v4 }
 0x23a   :  { %2155 = vpow2.f32 %v808_v29  ;;  %v373_v40 = vsel %vm307_vm2, %v2707_v34, 0.0  ;;  %v347_v41 = vsub.f32 %v2648_v38, %v339_v39 }
 0x23c   :  { %v362_v45 = vmul.f32 1.442695, %v347_v41 }
 0x23d   :  { %v789_v31 = vpop.xlane.xlu2 %788 }
 0x23e   :  { %v801_v13 = vsub.f32 %v2655_v44, %v789_v31  ;;  %v783_v46 = vpop.xlane.xlu0 %782 }
 0x23f   :  { %v798_v48 = vsub.f32 %v2653_v43, %v783_v46 }
 0x240   :  { %v812_v35 = vmul.f32 1.442695, %v801_v13  ;;  %v2709_v37 = vpop.eup %2155 }
 0x241   :  { %v806_v50 = vmul.f32 1.442695, %v798_v48 }
 0x242   :  { %2157 = vpow2.f32 %v812_v35 }
 0x243   :  { %2159 = vpow2.f32 %v362_v45 }
 0x244   :  { %2161 = vpow2.f32 %v356_v47 }
 0x245   :  { %2163 = vpow2.f32 %v806_v50 }
 0x247   :  { %365 = vadd.xlane.f32.xlu1 %v364_v18 }
 0x248   :  { %v2717_v44 = vpop.eup %2157 }
 0x249   :  { %v2724_v38 = vpop.eup %2159 }
 0x24a   :  { %v2729_v52 = vpop.eup %2161  ;;  %v385_v30 = vsel %vm307_vm2, %v2724_v38, 0.0 }
 0x24b   :  { %v2733_v55 = vpop.eup %2163  ;;  %v376_v2 = vsel %vm307_vm2, %v2729_v52, 0.0 }
 0x24d   :  { %v787_v57 = vpop.xlane.xlu1 %786 }
 0x24e   :  { %416 = vrot.lane.b32.xlu2 %v2694_v24, %s2399_s1  ;;  %v800_v39 = vsub.f32 %v2660_v49, %v787_v57 }
 0x24f   :  { %371 = vadd.xlane.f32.xlu1 %v370_v19  ;;  %v382_v19 = vsel %vm307_vm2, %v2702_v33, 0.0 }
 0x255   :  { %v795_v58 = vpop.xlane.xlu2 %794 }
 0x256   :  { %424 = vrot.lane.b32.xlu2 %v2702_v33, %s2399_s1  ;;  %v804_v61 = vsub.f32 %v2664_v53, %v795_v58 }
 0x258   :  { %v818_v0 = vmul.f32 1.442695, %v804_v61 }
 0x25d   :  { %v791_v51 = vpop.xlane.xlu0 %790 }
 0x25e   :  { %872 = vrot.lane.b32.xlu2 %v2709_v37, %s2399_s1  ;;  %v802_v32 = vsub.f32 %v2668_v56, %v791_v51  ;;  %v831_v56 = vsel %vm307_vm2, %v2717_v44, 0.0 }
 0x25f   :  { %374 = vadd.xlane.f32.xlu0 %v373_v40  ;;  %v810_v40 = vmul.f32 1.442695, %v800_v39 }
 0x260   :  { %v814_v54 = vmul.f32 1.442695, %v802_v32 }
 0x262   :  { %2165 = vpow2.f32 %v814_v54 }
 0x263   :  { %2167 = vpow2.f32 %v818_v0 }
 0x265   :  { %v793_v60 = vpop.xlane.xlu1 %792 }
 0x266   :  { %876 = vrot.lane.b32.xlu2 %v2717_v44, %s2399_s1  ;;  %v803_v62 = vsub.f32 %v2672_v59, %v793_v60 }
 0x268   :  { %418 = vrot.lane.b32.xlu1 %v2707_v34, %s2399_s1  ;;  %v2737_v43 = vpop.eup %2165  ;;  %v816_v1 = vmul.f32 1.442695, %v803_v62 }
 0x269   :  { %v2748_v5 = vpop.eup %2167  ;;  %v834_v54 = vsel %vm307_vm2, %v2737_v43, 0.0 }
 0x26a   :  { %2169 = vpow2.f32 %v816_v1  ;;  %v840_v17 = vsel %vm307_vm2, %v2748_v5, 0.0 }
 0x26b   :  { %2171 = vpow2.f32 %v358_v11 }
 0x270   :  { %426 = vrot.lane.b32.xlu1 %v2724_v38, %s2399_s1  ;;  %v2750_v7 = vpop.eup %2169 }
 0x271   :  { %v837_v53 = vsel %vm307_vm2, %v2750_v7, 0.0  ;;  %v2756_v59 = vpop.eup %2171 }
 0x273   :  { %420 = vrot.lane.b32.xlu0 %v2729_v52, %s2399_s1 }
 0x275   :  { %v797_v6 = vpop.xlane.xlu2 %796 }
 0x276   :  { %v805_v22 = vsub.f32 %v2676_v63, %v797_v6  ;;  %v379_v63 = vsel %vm307_vm2, %v2756_v59, 0.0 }
 0x278   :  { %870 = vrot.lane.b32.xlu1 %v2733_v55, %s2399_s1  ;;  %v820_v15 = vmul.f32 1.442695, %v805_v22 }
 0x27a   :  { %2173 = vpow2.f32 %v820_v15 }
 0x27b   :  { %2175 = vpow2.f32 %v810_v40 }
 0x280   :  { %878 = vrot.lane.b32.xlu1 %v2737_v43, %s2399_s1  ;;  %v2761_v16 = vpop.eup %2173 }
 0x281   :  { %v843_v35 = vsel %vm307_vm2, %v2761_v16, 0.0  ;;  %v2789_v46 = vpop.eup %2175 }
 0x28f   :  { %832 = vadd.xlane.f32.xlu2 %v831_v56  ;;  %v413_v18 = vpop.permute.xlu1 %412 }
 0x290   :  { %v436_v20 = vsel %vm307_vm2, %v413_v18, 0.0 }
 0x29d   :  { %377 = vadd.xlane.f32.xlu0 %v376_v2 }
 0x2a7   :  { %882 = vrot.lane.b32.xlu2 %v2748_v5, %s2399_s1  ;;  %v415_v25 = vpop.permute.xlu0 %414 }
 0x2a8   :  { %v439_v26 = vsel %vm307_vm2, %v415_v25, 0.0 }
 0x2a9   :  { %v2768_v21 = vpop.xlane.xlu2 %368 }
 0x2aa   :  { %838 = vadd.xlane.f32.xlu1 %v837_v53 }
 0x2b1   :  { %422 = vrot.lane.b32.xlu0 %v2756_v59, %s2399_s1  ;;  %v417_v27 = vpop.permute.xlu2 %416 }
 0x2b2   :  { %v442_v29 = vsel %vm307_vm2, %v417_v27, 0.0 }
 0x2b9   :  { %v425_v45 = vpop.permute.xlu2 %424 }
 0x2ba   :  { %v2770_v23 = vpop.xlane.xlu1 %365  ;;  %v454_v47 = vsel %vm307_vm2, %v425_v45, 0.0 }
 0x2c1   :  { %v873_v48 = vpop.permute.xlu2 %872 }
 0x2c2   :  { %v2777_v28 = vpop.xlane.xlu1 %371  ;;  %v897_v50 = vsel %vm307_vm2, %v873_v48, 0.0 }
 0x2c3   :  { %884 = vrot.lane.b32.xlu1 %v2761_v16, %s2399_s1 }
 0x2c9   :  { %v2798_v57 = vpop.permute.xlu2 %876 }
 0x2d0   :  { %841 = vadd.xlane.f32.xlu2 %v840_v17 }
 0x2d2   :  { %v2782_v31 = vpop.xlane.xlu0 %374 }
 0x2d8   :  { %437 = vadd.xlane.f32.xlu2 %v436_v20 }
 0x2da   :  { %v419_v13 = vpop.permute.xlu1 %418 }
 0x2db   :  { %380 = vadd.xlane.f32.xlu0 %v379_v63  ;;  %v445_v36 = vsel %vm307_vm2, %v419_v13, 0.0 }
 0x2e0   :  { %440 = vadd.xlane.f32.xlu2 %v439_v26 }
 0x2e2   :  { %v427_v58 = vpop.permute.xlu1 %426 }
 0x2e3   :  { %383 = vadd.xlane.f32.xlu0 %v382_v19  ;;  %v457_v19 = vsel %vm307_vm2, %v427_v58, 0.0 }
 0x2e5   :  { %v421_v41 = vpop.permute.xlu0 %420 }
 0x2e6   :  { %v448_v42 = vsel %vm307_vm2, %v421_v41, 0.0 }
 0x2e8   :  { %443 = vadd.xlane.f32.xlu2 %v442_v29 }
 0x2ea   :  { %v871_v61 = vpop.permute.xlu1 %870 }
 0x2eb   :  { %386 = vadd.xlane.f32.xlu0 %v385_v30 }
 0x2ed   :  { %844 = vadd.xlane.f32.xlu1 %v843_v35 }
 0x2f0   :  { %446 = vadd.xlane.f32.xlu2 %v445_v36 }
 0x2f2   :  { %v2806_v0 = vpop.permute.xlu1 %878 }
 0x2f8   :  { %449 = vadd.xlane.f32.xlu2 %v448_v42  ;;  %v894_v42 = vsel %vm307_vm2, %v871_v61, 0.0 }
 0x2ff   :  { %874 = vrot.lane.b32.xlu0 %v2789_v46, %s2399_s1 }
 0x300   :  { %455 = vadd.xlane.f32.xlu2 %v454_v47 }
 0x302   :  { %v2800_v56 = vpop.xlane.xlu2 %832 }
 0x308   :  { %898 = vadd.xlane.f32.xlu2 %v897_v50 }
 0x30a   :  { %v2802_v60 = vpop.permute.xlu2 %882 }
 0x310   :  { %v378_v49 = vpop.xlane.xlu0 %377 }
 0x31d   :  { %v839_v4 = vpop.xlane.xlu1 %838 }
 0x323   :  { %v423_v51 = vpop.permute.xlu0 %422 }
 0x324   :  { %v451_v32 = vsel %vm307_vm2, %v423_v51, 0.0 }
 0x325   :  { %452 = vadd.xlane.f32.xlu1 %v451_v32 }
 0x329   :  { %835 = vadd.xlane.f32.xlu0 %v834_v54 }
 0x335   :  { %v885_v6 = vpop.permute.xlu1 %884 }
 0x336   :  { %v915_v54 = vsel %vm307_vm2, %v885_v6, 0.0 }
 0x33d   :  { %880 = vrot.lane.b32.xlu0 %v2750_v7, %s2399_s1 }
 0x343   :  { %v842_v62 = vpop.xlane.xlu2 %841 }
 0x34b   :  { %v2808_v1 = vpop.xlane.xlu2 %437 }
 0x34e   :  { %v381_v2 = vpop.xlane.xlu0 %380 }
 0x353   :  { %v2810_v11 = vpop.xlane.xlu2 %440 }
 0x356   :  { %v384_v53 = vpop.xlane.xlu0 %383 }
 0x35b   :  { %v444_v22 = vpop.xlane.xlu2 %443 }
 0x35c   :  { %2177 = vrcp.f32 %v444_v22 }
 0x35e   :  { %v387_v15 = vpop.xlane.xlu0 %386 }
 0x35f   :  { %2179 = vrcp.f32 %v387_v15 }
 0x360   :  { %2181 = vrcp.f32 %v384_v53  ;;  %v845_v17 = vpop.xlane.xlu1 %844 }
 0x361   :  { %2183 = vrcp.f32 %v845_v17 }
 0x362   :  { %v2178_v18 = vpop.eup %2177  ;;  %2185 = vrcp.f32 %v842_v62  ;;  %v903_v62 = vsel %vm307_vm2, %v2798_v57, 0.0 }
 0x363   :  { %v2812_v20 = vpop.xlane.xlu2 %446  ;;  %v470_v63 = vmul.f32 %v2178_v18, %v2694_v24  ;;  %2187 = vrcp.f32 %v381_v2 }
 0x364   :  { %2189 = vrcp.f32 %v839_v4 }
 0x365   :  { %v2180_v25 = vpop.eup %2179  ;;  %535 = vrot.lane.b32.xlu2 %v470_v63, %s2399_s1  ;;  %2191 = vrcp.f32 %v378_v49  ;;  %v825_v63 = vsel %vm307_vm2, %v2709_v37, 0.0 }
 0x366   :  { %v2182_v26 = vpop.eup %2181  ;;  %v403_v27 = vmul.f32 %v2180_v25, %v2724_v38  ;;  %2193 = vrcp.f32 %v2782_v31 }
 0x367   :  { %v2184_v29 = vpop.eup %2183  ;;  %458 = vadd.xlane.f32.xlu0 %v457_v19  ;;  %v402_v35 = vmul.f32 %v2182_v26, %v2702_v33  ;;  %2195 = vrcp.f32 %v2777_v28  ;;  %v912_v26 = vsel %vm307_vm2, %v2802_v60, 0.0 }
 0x368   :  { %1992 = vmatpush.xpose.msk.msra.mxu3 %vm307_vm2, %v403_v27  ;;  %v861_v30 = vmul.f32 %v2184_v29, %v2761_v16  ;;  %v2186_v13 = vpop.eup %2185 }
 0x369   :  { %v2188_v36 = vpop.eup %2187  ;;  %v860_v40 = vmul.f32 %v2186_v13, %v2748_v5 }
 0x36a   :  { %2042 = vmatpush.xpose.msk.msrb.mxu0 %vm307_vm2, %v861_v30  ;;  %v2190_v41 = vpop.eup %2189  ;;  %v401_v45 = vmul.f32 %v2188_v36, %v2756_v59 }
 0x36b   :  { %v450_v39 = vpop.xlane.xlu2 %449  ;;  %v2192_v47 = vpop.eup %2191  ;;  %v859_v48 = vmul.f32 %v2190_v41, %v2750_v7 }
 0x36c   :  { %1993 = vmatpush.xpose.msk.msra.mxu3 %vm307_vm2, %v402_v35  ;;  %v400_v31 = vmul.f32 %v2192_v47, %v2729_v52  ;;  %v2194_v51 = vpop.eup %2193 }
 0x36d   :  { %v399_v58 = vmul.f32 %v2194_v51, %v2707_v34  ;;  %v2196_v28 = vpop.eup %2195 }
 0x36e   :  { %2043 = vmatpush.xpose.msk.msrb.mxu0 %vm307_vm2, %v860_v40  ;;  %v398_v2 = vmul.f32 %v2196_v28, %v2694_v24 }
 0x36f   :  { %895 = vadd.xlane.f32.xlu0 %v894_v42 }
 0x370   :  { %1994 = vmatpush.xpose.msk.msra.mxu3 %vm307_vm2, %v401_v45 }
 0x371   :  { %v875_v50 = vpop.permute.xlu0 %874 }
 0x372   :  { %2044 = vmatpush.xpose.msk.msrb.mxu0 %vm307_vm2, %v859_v48  ;;  %v900_v49 = vsel %vm307_vm2, %v875_v50, 0.0 }
 0x373   :  { %901 = vadd.xlane.f32.xlu1 %v900_v49  ;;  %v456_v32 = vpop.xlane.xlu2 %455  ;;  %v27_v49 = vld [vmem:[%s3401_s2 + $0x30] sm:$0xff] }
 0x374   :  { %2197 = vrcp.f32 %v456_v32  ;;  %1995 = vmatpush.xpose.msk.msra.mxu3 %vm307_vm2, %v400_v31 }
 0x375   :  { %2199 = vrcp.f32 %v2768_v21 }
 0x376   :  { %2201 = vrcp.f32 %v2770_v23  ;;  %v906_v23 = vsel %vm307_vm2, %v2806_v0, 0.0 }
 0x377   :  { %916 = vadd.xlane.f32.xlu0 %v915_v54  ;;  %2203 = vrcp.f32 %v2810_v11 }
 0x378   :  { %1996 = vmatpush.xpose.msk.msra.mxu3 %vm307_vm2, %v399_v58  ;;  %2205 = vrcp.f32 %v2812_v20 }
 0x379   :  { %2207 = vrcp.f32 %v450_v39 }
 0x37a   :  { %v2198_v61 = vpop.eup %2197 }
 0x37b   :  { %v2200_v4 = vpop.eup %2199  ;;  %904 = vadd.xlane.f32.xlu1 %v903_v62  ;;  %v474_v21 = vmul.f32 %v2198_v61, %v2702_v33 }
 0x37c   :  { %1997 = vmatpush.xpose.msk.msra.mxu3 %vm307_vm2, %v398_v2  ;;  %v397_v53 = vmul.f32 %v2200_v4, %v2684_v9  ;;  %v2202_v6 = vpop.eup %2201  ;;  %v899_v2 = vpop.xlane.xlu2 %898 }
 0x37d   :  { %543 = vrot.lane.b32.xlu2 %v474_v21, %s2399_s1  ;;  %v396_v24 = vmul.f32 %v2202_v6, %v2680_v3  ;;  %v2204_v33 = vpop.eup %2203 }
 0x37e   :  { %v469_v57 = vmul.f32 %v2204_v33, %v2684_v9  ;;  %v2206_v22 = vpop.eup %2205 }
 0x37f   :  { %v471_v11 = vmul.f32 %v2206_v22, %v2707_v34  ;;  %v2208_v15 = vpop.eup %2207 }
 0x380   :  { %1998 = vmatpush.xpose.msk.msra.mxu3 %vm307_vm2, %v397_v53  ;;  %v472_v0 = vmul.f32 %v2208_v15, %v2729_v52  ;;  %v822_v52 = vsel %vm307_vm2, %v2733_v55, 0.0 }
 0x383   :  { %907 = vadd.xlane.f32.xlu1 %v906_v23 }
 0x384   :  { %1999 = vmatpush.xpose.msk.msra.mxu3 %vm307_vm2, %v396_v24 }
 0x38b   :  { %533 = vrot.lane.b32.xlu0 %v469_v57, %s2399_s1 }
 0x393   :  { %537 = vrot.lane.b32.xlu0 %v471_v11, %s2399_s1 }
 0x398   :  { %v453_v19 = vpop.xlane.xlu1 %452 }
 0x39b   :  { %539 = vrot.lane.b32.xlu0 %v472_v0, %s2399_s1 }
 0x39c   :  { %v836_v17 = vpop.xlane.xlu0 %835 }
 0x39d   :  { %2209 = vrcp.f32 %v836_v17 }
 0x39e   :  { %2211 = vrcp.f32 %v2800_v56 }
 0x39f   :  { %2213 = vrcp.f32 %v453_v19 }
 0x3a3   :  { %v2210_v18 = vpop.eup %2209 }
 0x3a4   :  { %v858_v9 = vmul.f32 %v2210_v18, %v2737_v43  ;;  %v2212_v20 = vpop.eup %2211 }
 0x3a5   :  { %v857_v34 = vmul.f32 %v2212_v20, %v2717_v44  ;;  %v2214_v27 = vpop.eup %2213 }
 0x3a6   :  { %826 = vadd.xlane.f32.xlu2 %v825_v63  ;;  %2045 = vmatpush.xpose.msk.msrb.mxu0 %vm307_vm2, %v858_v9  ;;  %v473_v29 = vmul.f32 %v2214_v27, %v2756_v59 }
 0x3aa   :  { %2046 = vmatpush.xpose.msk.msrb.mxu0 %vm307_vm2, %v857_v34 }
 0x3ae   :  { %823 = vadd.xlane.f32.xlu2 %v822_v52 }
 0x3af   :  { %v881_v25 = vpop.permute.xlu0 %880 }
 0x3b0   :  { %v909_v56 = vsel %vm307_vm2, %v881_v25, 0.0 }
 0x3b1   :  { %910 = vadd.xlane.f32.xlu1 %v909_v56 }
 0x3b9   :  { %913 = vadd.xlane.f32.xlu1 %v912_v26 }
 0x3bf   :  { %v536_v6 = vpop.permute.xlu2 %535 }
 0x3c6   :  { %1086 = vrot.lane.b32.xlu2 %v2462_v8, %s2399_s1 }
 0x3d2   :  { %541 = vrot.lane.b32.xlu1 %v473_v29, %s2399_s1 }
 0x3d7   :  { %v544_v24 = vpop.permute.xlu2 %543 }
 0x3da   :  { %v459_v30 = vpop.xlane.xlu0 %458 }
 0x3db   :  { %2215 = vrcp.f32 %v459_v30 }
 0x3e1   :  { %v2216_v13 = vpop.eup %2215 }
 0x3e2   :  { %v475_v35 = vmul.f32 %v2216_v13, %v2724_v38  ;;  %v25_v38 = vld [vmem:[%s3401_s2 + $0x20] sm:$0xff]  ;;  %v896_v45 = vpop.xlane.xlu0 %895 }
 0x3e3   :  { %1964 = vmatmul.msk.f32.gmra.mxu0 %vm33_vm0, %v25_v38 }
 0x3e4   :  { %545 = vrot.lane.b32.xlu0 %v475_v35, %s2399_s1  ;;  %v2337_v35 = vld [vmem:[%s3399_s0 + $0x8] sm:$0xff] }
 0x3e6   :  { %v902_v36 = vpop.xlane.xlu1 %901 }
 0x3ea   :  { %v917_v31 = vpop.xlane.xlu0 %916 }
 0x3ee   :  { %v905_v60 = vpop.xlane.xlu1 %904 }
 0x3ef   :  { %2217 = vrcp.f32 %v905_v60  ;;  %v2339_v60 = vld [vmem:[%s3399_s0 + $0x18] sm:$0xff] }
 0x3f5   :  { %v2218_v39 = vpop.eup %2217 }
 0x3f6   :  { %v908_v40 = vpop.xlane.xlu1 %907  ;;  %v929_v8 = vmul.f32 %v2218_v39, %v2717_v44  ;;  %v26_v44 = vld [vmem:[%s3401_s2 + $0x28] sm:$0xff]  ;;  %v2340_v39 = vld [vmem:[%s3399_s0 + $0x20] sm:$0xff] }
 0x3f7   :  { %2219 = vrcp.f32 %v908_v40  ;;  %1965 = vmatmul.msk.f32.gmra.mxu0 %vm33_vm0, %v26_v44  ;;  %v2341_v40 = vld [vmem:[%s3399_s0 + $0x28] sm:$0xff]  ;;  %v99_v44 = vld [vmem:[%s3402_s3] sm:$0xff] }
 0x3f8   :  { %995 = vrot.lane.b32.xlu1 %v929_v8, %s2399_s1  ;;  %v2342_v8 = vld [vmem:[%s3399_s0 + $0x30] sm:$0xff] }
 0x3fd   :  { %v2220_v59 = vpop.eup %2219  ;;  %v534_v58 = vpop.permute.xlu0 %533 }
 0x3fe   :  { %v930_v41 = vmul.f32 %v2220_v59, %v2737_v43  ;;  %v828_v43 = vsel %vm307_vm2, %v2789_v46, 0.0  ;;  %v2343_v59 = vld [vmem:[%s3399_s0 + $0x38] sm:$0xff] }
 0x3ff   :  { %1966 = vmatmul.msk.f32.gmra.mxu0 %vm33_vm0, %v27_v49  ;;  %v2344_v49 = vld [vmem:[%s3399_s0] sm:$0xff] }
 0x400   :  { %997 = vrot.lane.b32.xlu1 %v930_v41, %s2399_s1 }
 0x405   :  { %v538_v62 = vpop.permute.xlu0 %537 }
 0x40d   :  { %v540_v53 = vpop.permute.xlu0 %539 }
 0x419   :  { %v827_v15 = vpop.xlane.xlu2 %826 }
 0x421   :  { %v824_v9 = vpop.xlane.xlu2 %823 }
 0x424   :  { %v911_v42 = vpop.xlane.xlu1 %910 }
 0x425   :  { %2221 = vrcp.f32 %v911_v42 }
 0x429   :  { %v1087_v30 = vpop.permute.xlu2 %1086 }
 0x42a   :  { %829 = vadd.xlane.f32.xlu1 %v828_v43 }
 0x42b   :  { %v2222_v47 = vpop.eup %2221 }
 0x42c   :  { %v914_v48 = vpop.xlane.xlu1 %913  ;;  %v931_v50 = vmul.f32 %v2222_v47, %v2750_v7  ;;  %v28_v7 = vld [vmem:[%s3401_s2 + $0x38] sm:$0xff]  ;;  %v100_v47 = vld [vmem:[%s3402_s3 + $0x8] sm:$0xff] }
 0x42d   :  { %2223 = vrcp.f32 %v914_v48  ;;  %1967 = vmatmul.msk.f32.gmra.mxu0 %vm33_vm0, %v28_v7  ;;  %v101_v48 = vld [vmem:[%s3402_s3 + $0x10] sm:$0xff]  ;;  %v2348_v7 = vld [vmem:[%s3399_s0 + $0x58] sm:$0xff] }
 0x42e   :  { %999 = vrot.lane.b32.xlu0 %v931_v50, %s2399_s1  ;;  %2225 = vrcp.f32 %v917_v31  ;;  %v102_v50 = vld [vmem:[%s3402_s3 + $0x18] sm:$0xff]  ;;  %v2345_v31 = vld [vmem:[%s3399_s0 + $0x40] sm:$0xff] }
 0x42f   :  { %2227 = vrcp.f32 %v2808_v1 }
 0x430   :  { %2229 = vrcp.f32 %v902_v36  ;;  %v2338_v36 = vld [vmem:[%s3399_s0 + $0x10] sm:$0xff] }
 0x431   :  { %2231 = vrcp.f32 %v899_v2 }
 0x432   :  { %2233 = vrcp.f32 %v896_v45 }
 0x433   :  { %v2224_v51 = vpop.eup %2223 }
 0x434   :  { %v932_v32 = vmul.f32 %v2224_v51, %v2748_v5  ;;  %v2226_v54 = vpop.eup %2225  ;;  %v2346_v51 = vld [vmem:[%s3399_s0 + $0x48] sm:$0xff] }
 0x435   :  { %v933_v28 = vmul.f32 %v2226_v54, %v2761_v16  ;;  %v2228_v61 = vpop.eup %2227  ;;  %v2349_v54 = vld [vmem:[%s3399_s0 + $0x60] sm:$0xff] }
 0x436   :  { %1001 = vrot.lane.b32.xlu0 %v932_v32, %s2399_s1  ;;  %v468_v5 = vmul.f32 %v2228_v61, %v2680_v3  ;;  %v2230_v4 = vpop.eup %2229  ;;  %v2347_v32 = vld [vmem:[%s3399_s0 + $0x50] sm:$0xff]  ;;  %v2352_v61 = vld [vmem:[%s3399_s0 + $0x78] sm:$0xff] }
 0x437   :  { %v928_v21 = vmul.f32 %v2230_v4, %v2789_v46  ;;  %v2232_v1 = vpop.eup %2231 }
 0x438   :  { %v927_v16 = vmul.f32 %v2232_v1, %v2709_v37  ;;  %v2234_v3 = vpop.eup %2233 }
 0x439   :  { %v926_v33 = vmul.f32 %v2234_v3, %v2733_v55 }
 0x43e   :  { %1003 = vrot.lane.b32.xlu0 %v933_v28, %s2399_s1  ;;  %v2351_v28 = vld [vmem:[%s3399_s0 + $0x70] sm:$0xff] }
 0x444   :  { %v542_v57 = vpop.permute.xlu1 %541 }
 0x446   :  { %531 = vrot.lane.b32.xlu0 %v468_v5, %s2399_s1 }
 0x44e   :  { %993 = vrot.lane.b32.xlu0 %v928_v21, %s2399_s1 }
 0x456   :  { %v546_v23 = vpop.permute.xlu0 %545  ;;  %991 = vrot.lane.b32.xlu0 %v927_v16, %s2399_s1 }
 0x457   :  { %2001 = vmatpush.xpose.msk.msrb.mxu3 %vm307_vm2, %v546_v23 }
 0x45b   :  { %2002 = vmatpush.xpose.msk.msrb.mxu3 %vm307_vm2, %v544_v24 }
 0x45e   :  { %989 = vrot.lane.b32.xlu0 %v926_v33, %s2399_s1 }
 0x45f   :  { %2003 = vmatpush.xpose.msk.msrb.mxu3 %vm307_vm2, %v542_v57 }
 0x460   :  { %v2924_v0 = vpop.f32.mrf.mxu0 }
 0x461   :  { %2000 = vmatmul.msk.f32.vlgmr.msra.gmra.mxu3 %vm307_vm2, %v2924_v0 }
 0x463   :  { %2004 = vmatpush.xpose.msk.msrb.mxu3 %vm307_vm2, %v540_v53 }
 0x466   :  { %1131 = vrot.lane.b32.xlu0 %v2468_v10, %s2399_s1 }
 0x467   :  { %2005 = vmatpush.xpose.msk.msrb.mxu3 %vm307_vm2, %v538_v62 }
 0x46a   :  { %v996_v22 = vpop.permute.xlu1 %995 }
 0x46b   :  { %2006 = vmatpush.xpose.msk.msrb.mxu3 %vm307_vm2, %v536_v6 }
 0x46f   :  { %2007 = vmatpush.xpose.msk.msrb.mxu3 %vm307_vm2, %v534_v58  ;;  %v2350_v58 = vld [vmem:[%s3399_s0 + $0x68] sm:$0xff] }
 0x472   :  { %v998_v11 = vpop.permute.xlu1 %997 }
 0x474   :  { %v2930_v52 = vpop.f32.mrf.mxu0 }
 0x47c   :  { %v2936_v27 = vpop.f32.mrf.mxu0 }
 0x49d   :  { %v830_v17 = vpop.xlane.xlu1 %829 }
 0x49e   :  { %2235 = vrcp.f32 %v830_v17 }
 0x49f   :  { %2237 = vrcp.f32 %v827_v15 }
 0x4a0   :  { %v1000_v18 = vpop.permute.xlu0 %999  ;;  %2239 = vrcp.f32 %v824_v9 }
 0x4a4   :  { %v2236_v10 = vpop.eup %2235 }
 0x4a5   :  { %v856_v20 = vmul.f32 %v2236_v10, %v2789_v46  ;;  %v2238_v63 = vpop.eup %2237 }
 0x4a6   :  { %v855_v25 = vmul.f32 %v2238_v63, %v2709_v37  ;;  %v2240_v56 = vpop.eup %2239 }
 0x4a7   :  { %2047 = vmatpush.xpose.msk.msrb.mxu0 %vm307_vm2, %v856_v20  ;;  %v854_v26 = vmul.f32 %v2240_v56, %v2733_v55 }
 0x4a8   :  { %v1002_v34 = vpop.permute.xlu0 %1001 }
 0x4aa   :  { %v2951_v13 = vpop.f32.mrf.mxu0 }
 0x4ab   :  { %2048 = vmatpush.xpose.msk.msrb.mxu0 %vm307_vm2, %v855_v25 }
 0x4af   :  { %2049 = vmatpush.xpose.msk.msrb.mxu0 %vm307_vm2, %v854_v26 }
 0x4b0   :  { %v1004_v19 = vpop.permute.xlu0 %1003 }
 0x4b2   :  { %2050 = vmatmul.msk.f32.vlgmr.msrb.gmra.mxu0 %vm307_vm2, %v2936_v27 }
 0x4b8   :  { %v532_v46 = vpop.permute.xlu0 %531 }
 0x4b9   :  { %2008 = vmatpush.xpose.msk.msrb.mxu3 %vm307_vm2, %v532_v46 }
 0x4bc   :  { %2009 = vmatmul.msk.f32.vlgmr.msrb.gmra.mxu3 %vm307_vm2, %v2930_v52 }
 0x4bd   :  { %2051 = vmatpush.xpose.msk.msra.mxu3 %vm307_vm2, %v1004_v19 }
 0x4c0   :  { %v994_v37 = vpop.permute.xlu0 %993 }
 0x4c1   :  { %2052 = vmatpush.xpose.msk.msra.mxu3 %vm307_vm2, %v1002_v34 }
 0x4c5   :  { %2053 = vmatpush.xpose.msk.msra.mxu3 %vm307_vm2, %v1000_v18 }
 0x4c8   :  { %v992_v55 = vpop.permute.xlu0 %991 }
 0x4c9   :  { %2054 = vmatpush.xpose.msk.msra.mxu3 %vm307_vm2, %v998_v11 }
 0x4cd   :  { %2055 = vmatpush.xpose.msk.msra.mxu3 %vm307_vm2, %v996_v22 }
 0x4d0   :  { %v990_v29 = vpop.permute.xlu0 %989 }
 0x4d1   :  { %2056 = vmatpush.xpose.msk.msra.mxu3 %vm307_vm2, %v994_v37 }
 0x4d5   :  { %2057 = vmatpush.xpose.msk.msra.mxu3 %vm307_vm2, %v992_v55 }
 0x4d8   :  { %v1132_v43 = vpop.permute.xlu0 %1131 }
 0x4d9   :  { %2058 = vmatpush.xpose.msk.msra.mxu3 %vm307_vm2, %v990_v29 }
 0x4dc   :  { %2059 = vmatmul.msk.f32.vlgmr.msra.gmra.mxu3 %vm307_vm2, %v2951_v13 }
 0x4dd   :  { %2136 = vmatpush.msrb.mxu3 %v1087_v30 }
 0x4e4   :  { %2065 = vmatmul.msk.f32.vlgmr.msrb.gmra.mxu3 %vm144_vm1, %v2337_v35  ;;  %v520_v41 = vpop.f32.mrf.mxu3 }
 0x4ec   :  { %2066 = vmatmul.msk.f32.gmra.mxu3 %vm144_vm1, %v2338_v36 }
 0x4f4   :  { %2067 = vmatmul.msk.f32.gmra.mxu3 %vm144_vm1, %v2339_v60 }
 0x4fc   :  { %2068 = vmatmul.msk.f32.gmra.mxu3 %vm144_vm1, %v2340_v39 }
 0x504   :  { %2069 = vmatmul.msk.f32.gmra.mxu3 %vm144_vm1, %v2341_v40 }
 0x50c   :  { %2070 = vmatmul.msk.f32.gmra.mxu3 %vm144_vm1, %v2342_v8 }
 0x514   :  { %2071 = vmatmul.msk.f32.gmra.mxu3 %vm144_vm1, %v2343_v59 }
 0x52f   :  { %v978_v45 = vpop.f32.mrf.mxu0 }
 0x53f   :  { %v583_v38 = vpop.f32.mrf.mxu3 }
 0x55f   :  { %v1041_v42 = vpop.f32.mrf.mxu3 }
 0x560   :  { %1068 = vmatpush.msra.mxu0 %v1041_v42 }
 0x562   :  { %1069 = vmatpush.msra.mxu0 %v978_v45 }
 0x564   :  { %1070 = vmatpush.msra.mxu0 %v583_v38 }
 0x566   :  { %1071 = vmatpush.msra.mxu0 %v520_v41 }
 0x567   :  { %2060 = vmatmul.msk.f32.vlgmr.msra.gmra.mxu0 %vm33_vm0, %v99_v44  ;;  %v1109_v57 = vpop.f32.mrf.mxu3 }
 0x568   :  { %1104 = vmatpush.msrb.mxu0 %v1087_v30 }
 0x56a   :  { %1149 = vmatpush.msra.mxu0 %v1132_v43 }
 0x56f   :  { %2061 = vmatmul.msk.f32.gmra.mxu0 %vm33_vm0, %v100_v47  ;;  %v1112_v22 = vpop.f32.mrf.mxu3 }
 0x577   :  { %2062 = vmatmul.msk.f32.gmra.mxu0 %vm33_vm0, %v101_v48  ;;  %v1115_v15 = vpop.f32.mrf.mxu3 }
 0x57f   :  { %2063 = vmatmul.msk.f32.gmra.mxu0 %vm33_vm0, %v102_v50  ;;  %v1118_v10 = vpop.f32.mrf.mxu3 }
 0x587   :  { %2064 = vmatmul.msk.f32.vlgmr.msrb.gmra.mxu0 %vm144_vm1, %v2344_v49  ;;  %v1121_v26 = vpop.f32.mrf.mxu3 }
 0x58f   :  { %2072 = vmatmul.msk.f32.vlgmr.msra.gmra.mxu0 %vm144_vm1, %v2345_v31  ;;  %v1124_v46 = vpop.f32.mrf.mxu3 }
 0x597   :  { %2073 = vmatmul.msk.f32.gmra.mxu0 %vm144_vm1, %v2346_v51  ;;  %v1127_v30 = vpop.f32.mrf.mxu3 }
 0x59f   :  { %2074 = vmatmul.msk.f32.gmra.mxu0 %vm144_vm1, %v2347_v32 }
 0x5a7   :  { %2075 = vmatmul.msk.f32.gmra.mxu0 %vm144_vm1, %v2348_v7 }
 0x5af   :  { %2076 = vmatmul.msk.f32.gmra.mxu0 %vm144_vm1, %v2349_v54 }
 0x5b7   :  { %2077 = vmatmul.msk.f32.gmra.mxu0 %vm144_vm1, %v2350_v58 }
 0x5bf   :  { %2078 = vmatmul.msk.f32.gmra.mxu0 %vm144_vm1, %v2351_v28 }
 0x5c7   :  { %2079 = vmatmul.msk.f32.gmra.mxu0 %vm144_vm1, %v2352_v61 }
 0x5e4   :  { %v3035_v62 = vpop.f32.mrf.mxu0 }
 0x5ec   :  { %v3037_v5 = vpop.f32.mrf.mxu0 }
 0x5f4   :  { %v3039_v2 = vpop.f32.mrf.mxu0 }
 0x5fc   :  { %v3041_v4 = vpop.f32.mrf.mxu0 }
 0x604   :  { %v1106_v21 = vpop.f32.mrf.mxu0 }
 0x60c   :  { %v1151_v53 = vpop.f32.mrf.mxu0 }
 0x614   :  { %v1154_v1 = vpop.f32.mrf.mxu0 }
 0x61c   :  { %v1157_v6 = vpop.f32.mrf.mxu0 }
 0x624   :  { %v1160_v16 = vpop.f32.mrf.mxu0 }
 0x625   :  { %1189 = vrot.lane.b32.xlu0 %v1160_v16, %s2399_s1 }
 0x62c   :  { %v1163_v23 = vpop.f32.mrf.mxu0 }
 0x62d   :  { %1191 = vrot.lane.b32.xlu2 %v1163_v23, %s2399_s1 }
 0x634   :  { %v1166_v3 = vpop.f32.mrf.mxu0 }
 0x635   :  { %1185 = vrot.lane.b32.xlu2 %v1154_v1, %s2399_s1  ;;  %1193 = vrot.lane.b32.xlu0 %v1166_v3, %s2399_s1 }
 0x63c   :  { %v1169_v24 = vpop.f32.mrf.mxu0 }
 0x63d   :  { %1195 = vrot.lane.b32.xlu0 %v1169_v24, %s2399_s1 }
 0x644   :  { %v1172_v33 = vpop.f32.mrf.mxu0 }
 0x645   :  { %1183 = vrot.lane.b32.xlu0 %v1151_v53, %s2399_s1  ;;  %1197 = vrot.lane.b32.xlu1 %v1172_v33, %s2399_s1 }
 0x64d   :  { %1187 = vrot.lane.b32.xlu1 %v1157_v6, %s2399_s1 }
 0x687   :  { %v1192_v11 = vpop.permute.xlu2 %1191 }
 0x688   :  { %v1211_v20 = vsel %vm307_vm2, %v1118_v10, %v1192_v11 }
 0x689   :  { %v1219_v25 = vmul.f32 0.35355338, %v1211_v20 }
 0x68f   :  { %v1186_v17 = vpop.permute.xlu2 %1185 }
 0x690   :  { %v1208_v18 = vsel %vm307_vm2, %v1109_v57, %v1186_v17 }
 0x691   :  { %v1216_v9 = vmul.f32 0.35355338, %v1208_v18 }
 0x693   :  { %1225 = vmax.xlane.f32.xlu2 %v1216_v9 }
 0x697   :  { %v1190_v63 = vpop.permute.xlu0 %1189 }
 0x698   :  { %v1210_v34 = vsel %vm307_vm2, %v1115_v15, %v1190_v63 }
 0x699   :  { %v1218_v56 = vmul.f32 0.35355338, %v1210_v34 }
 0x69b   :  { %1231 = vmax.xlane.f32.xlu2 %v1219_v25  ;;  %1229 = vmax.xlane.f32.xlu1 %v1218_v56 }
 0x6a7   :  { %v1194_v19 = vpop.permute.xlu0 %1193 }
 0x6a8   :  { %v1212_v42 = vsel %vm307_vm2, %v1121_v26, %v1194_v19 }
 0x6a9   :  { %v1220_v45 = vmul.f32 0.35355338, %v1212_v42 }
 0x6af   :  { %v1196_v37 = vpop.permute.xlu0 %1195 }
 0x6b0   :  { %v1213_v55 = vsel %vm307_vm2, %v1124_v46, %v1196_v37 }
 0x6b1   :  { %v1221_v29 = vmul.f32 0.35355338, %v1213_v55 }
 0x6b3   :  { %1235 = vmax.xlane.f32.xlu2 %v1221_v29 }
 0x6b7   :  { %v1198_v35 = vpop.permute.xlu1 %1197  ;;  %v1184_v39 = vpop.permute.xlu0 %1183 }
 0x6b8   :  { %v1214_v36 = vsel %vm307_vm2, %v1127_v30, %v1198_v35  ;;  %v1207_v40 = vsel %vm307_vm2, %v1106_v21, %v1184_v39 }
 0x6b9   :  { %v1222_v60 = vmul.f32 0.35355338, %v1214_v36  ;;  %v1215_v41 = vmul.f32 0.35355338, %v1207_v40 }
 0x6bb   :  { %1237 = vmax.xlane.f32.xlu1 %v1222_v60 }
 0x6bf   :  { %v1188_v8 = vpop.permute.xlu1 %1187 }
 0x6c0   :  { %v1209_v59 = vsel %vm307_vm2, %v1112_v22, %v1188_v8 }
 0x6c1   :  { %v1217_v38 = vmul.f32 0.35355338, %v1209_v59 }
 0x6c3   :  { %1223 = vmax.xlane.f32.xlu1 %v1215_v41  ;;  %1227 = vmax.xlane.f32.xlu0 %v1217_v38 }
 0x6cb   :  { %1233 = vmax.xlane.f32.xlu0 %v1220_v45 }
 0x706   :  { %v1226_v44 = vpop.xlane.xlu2 %1225 }
 0x707   :  { %v1240_v43 = vsub.f32 %v1216_v9, %v1226_v44 }
 0x709   :  { %v1249_v47 = vmul.f32 1.442695, %v1240_v43 }
 0x70b   :  { %2241 = vpow2.f32 %v1249_v47 }
 0x70e   :  { %v1232_v48 = vpop.xlane.xlu2 %1231  ;;  %v1230_v32 = vpop.xlane.xlu1 %1229 }
 0x70f   :  { %v1243_v50 = vsub.f32 %v1219_v25, %v1232_v48  ;;  %v1242_v23 = vsub.f32 %v1218_v56, %v1230_v32 }
 0x711   :  { %v3059_v49 = vpop.eup %2241  ;;  %v1255_v31 = vmul.f32 1.442695, %v1243_v50  ;;  %v1253_v33 = vmul.f32 1.442695, %v1242_v23 }
 0x712   :  { %1313 = vrot.lane.b32.xlu0 %v3059_v49, %s2399_s1 }
 0x713   :  { %2243 = vpow2.f32 %v1255_v31 }
 0x719   :  { %v3063_v51 = vpop.eup %2243 }
 0x71a   :  { %1319 = vrot.lane.b32.xlu0 %v3063_v51, %s2399_s1 }
 0x726   :  { %v1236_v22 = vpop.xlane.xlu2 %1235 }
 0x727   :  { %v1245_v17 = vsub.f32 %v1221_v29, %v1236_v22 }
 0x729   :  { %v1259_v18 = vmul.f32 1.442695, %v1245_v17 }
 0x72e   :  { %v1238_v7 = vpop.xlane.xlu1 %1237 }
 0x72f   :  { %v1246_v54 = vsub.f32 %v1222_v60, %v1238_v7 }
 0x731   :  { %v1261_v58 = vmul.f32 1.442695, %v1246_v54 }
 0x733   :  { %2245 = vpow2.f32 %v1261_v58 }
 0x736   :  { %v1228_v28 = vpop.xlane.xlu0 %1227  ;;  %v1224_v61 = vpop.xlane.xlu1 %1223 }
 0x737   :  { %v1241_v21 = vsub.f32 %v1217_v38, %v1228_v28  ;;  %v1239_v53 = vsub.f32 %v1215_v41, %v1224_v61 }
 0x739   :  { %v3067_v1 = vpop.eup %2245  ;;  %v1251_v6 = vmul.f32 1.442695, %v1241_v21  ;;  %v1247_v16 = vmul.f32 1.442695, %v1239_v53 }
 0x73a   :  { %1325 = vrot.lane.b32.xlu0 %v3067_v1, %s2399_s1 }
 0x73b   :  { %2247 = vpow2.f32 %v1251_v6 }
 0x73c   :  { %2249 = vpow2.f32 %v1247_v16 }
 0x73e   :  { %v1234_v3 = vpop.xlane.xlu0 %1233 }
 0x73f   :  { %v1244_v24 = vsub.f32 %v1220_v45, %v1234_v3 }
 0x741   :  { %v3071_v57 = vpop.eup %2247  ;;  %v1257_v11 = vmul.f32 1.442695, %v1244_v24 }
 0x742   :  { %v3073_v15 = vpop.eup %2249  ;;  %1315 = vrot.lane.b32.xlu1 %v3071_v57, %s2399_s1 }
 0x743   :  { %2251 = vpow2.f32 %v1257_v11  ;;  %1311 = vrot.lane.b32.xlu2 %v3073_v15, %s2399_s1  ;;  %v1269_v11 = vsel %vm307_vm2, %v3071_v57, 0.0  ;;  %v1263_v17 = vsel %vm307_vm2, %v3073_v15, 0.0 }
 0x744   :  { %2253 = vpow2.f32 %v1253_v33 }
 0x745   :  { %2255 = vpow2.f32 %v1259_v18  ;;  %v1266_v18 = vsel %vm307_vm2, %v3059_v49, 0.0 }
 0x749   :  { %v3079_v9 = vpop.eup %2251 }
 0x74a   :  { %v3081_v10 = vpop.eup %2253  ;;  %1321 = vrot.lane.b32.xlu1 %v3079_v9, %s2399_s1  ;;  %v1278_v33 = vsel %vm307_vm2, %v3079_v9, 0.0 }
 0x74b   :  { %1317 = vrot.lane.b32.xlu2 %v3081_v10, %s2399_s1  ;;  %v3087_v20 = vpop.eup %2255  ;;  %v1272_v22 = vsel %vm307_vm2, %v3081_v10, 0.0 }
 0x74c   :  { %v1281_v24 = vsel %vm307_vm2, %v3087_v20, 0.0 }
 0x753   :  { %1323 = vrot.lane.b32.xlu2 %v3087_v20, %s2399_s1 }
 0x784   :  { %v1314_v63 = vpop.permute.xlu0 %1313 }
 0x785   :  { %v1338_v35 = vsel %vm307_vm2, %v1314_v63, 0.0 }
 0x78c   :  { %v1320_v34 = vpop.permute.xlu0 %1319 }
 0x78d   :  { %v1347_v25 = vsel %vm307_vm2, %v1320_v34, 0.0 }
 0x78e   :  { %1348 = vadd.xlane.f32.xlu1 %v1347_v25 }
 0x79d   :  { %v1312_v56 = vpop.permute.xlu2 %1311 }
 0x79e   :  { %v1335_v60 = vsel %vm307_vm2, %v1312_v56, 0.0 }
 0x7a5   :  { %v1318_v26 = vpop.permute.xlu2 %1317 }
 0x7a6   :  { %v1344_v19 = vsel %vm307_vm2, %v1318_v26, 0.0 }
 0x7a7   :  { %1345 = vadd.xlane.f32.xlu0 %v1344_v19 }
 0x7ac   :  { %v1326_v46 = vpop.permute.xlu0 %1325 }
 0x7ad   :  { %v1324_v37 = vpop.permute.xlu2 %1323  ;;  %v1356_v55 = vsel %vm307_vm2, %v1326_v46, 0.0 }
 0x7ae   :  { %1357 = vadd.xlane.f32.xlu1 %v1356_v55  ;;  %v1353_v29 = vsel %vm307_vm2, %v1324_v37, 0.0  ;;  %v2353_v55 = vld [vmem:[%s3399_s0 + $0xc0] sm:$0xff] }
 0x7af   :  { %1354 = vadd.xlane.f32.xlu0 %v1353_v29  ;;  %v2354_v29 = vld [vmem:[%s3399_s0 + $0xc8] sm:$0xff] }
 0x7b4   :  { %v1316_v30 = vpop.permute.xlu1 %1315 }
 0x7b5   :  { %v1341_v36 = vsel %vm307_vm2, %v1316_v30, 0.0  ;;  %v2355_v30 = vld [vmem:[%s3399_s0 + $0xd0] sm:$0xff] }
 0x7b6   :  { %1339 = vadd.xlane.f32.xlu1 %v1338_v35  ;;  %1342 = vadd.xlane.f32.xlu2 %v1341_v36 }
 0x7b7   :  { %1336 = vadd.xlane.f32.xlu0 %v1335_v60 }
 0x7bc   :  { %v1322_v39 = vpop.permute.xlu1 %1321 }
 0x7bd   :  { %v1350_v40 = vsel %vm307_vm2, %v1322_v39, 0.0  ;;  %v2356_v39 = vld [vmem:[%s3399_s0 + $0xd8] sm:$0xff] }
 0x7be   :  { %1351 = vadd.xlane.f32.xlu2 %v1350_v40 }
 0x801   :  { %v1349_v8 = vpop.xlane.xlu1 %1348 }
 0x802   :  { %2257 = vrcp.f32 %v1349_v8 }
 0x808   :  { %v2258_v59 = vpop.eup %2257 }
 0x809   :  { %v1371_v41 = vmul.f32 %v2258_v59, %v3063_v51 }
 0x80b   :  { %1441 = vrot.lane.b32.xlu0 %v1371_v41, %s2399_s1 }
 0x81a   :  { %v1346_v38 = vpop.xlane.xlu0 %1345 }
 0x81b   :  { %2259 = vrcp.f32 %v1346_v38 }
 0x821   :  { %v2260_v42 = vpop.eup %2259  ;;  %v1358_v31 = vpop.xlane.xlu1 %1357 }
 0x822   :  { %v1355_v45 = vpop.xlane.xlu0 %1354  ;;  %v1370_v44 = vmul.f32 %v2260_v42, %v3081_v10  ;;  %v2357_v42 = vld [vmem:[%s3399_s0 + $0xe0] sm:$0xff] }
 0x823   :  { %2261 = vrcp.f32 %v1355_v45 }
 0x824   :  { %1439 = vrot.lane.b32.xlu2 %v1370_v44, %s2399_s1 }
 0x829   :  { %v2262_v43 = vpop.eup %2261  ;;  %v1343_v47 = vpop.xlane.xlu2 %1342 }
 0x82a   :  { %v1337_v48 = vpop.xlane.xlu0 %1336  ;;  %2263 = vrcp.f32 %v1343_v47  ;;  %v1373_v50 = vmul.f32 %v2262_v43, %v3087_v20  ;;  %v1340_v61 = vpop.xlane.xlu1 %1339 }
 0x82b   :  { %2265 = vrcp.f32 %v1337_v48 }
 0x82c   :  { %1445 = vrot.lane.b32.xlu1 %v1373_v50, %s2399_s1  ;;  %2267 = vrcp.f32 %v1358_v31  ;;  %v2358_v50 = vld [vmem:[%s3399_s0 + $0xe8] sm:$0xff] }
 0x830   :  { %v2264_v32 = vpop.eup %2263 }
 0x831   :  { %v2266_v7 = vpop.eup %2265  ;;  %v1352_v54 = vpop.xlane.xlu2 %1351  ;;  %v1369_v58 = vmul.f32 %v2264_v32, %v3071_v57 }
 0x832   :  { %2269 = vrcp.f32 %v1352_v54  ;;  %v1367_v28 = vmul.f32 %v2266_v7, %v3073_v15  ;;  %v2268_v21 = vpop.eup %2267  ;;  %v2359_v54 = vld [vmem:[%s3399_s0 + $0xf0] sm:$0xff] }
 0x833   :  { %2271 = vrcp.f32 %v1340_v61  ;;  %v1374_v16 = vmul.f32 %v2268_v21, %v3067_v1 }
 0x834   :  { %1437 = vrot.lane.b32.xlu1 %v1369_v58, %s2399_s1  ;;  %1433 = vrot.lane.b32.xlu2 %v1367_v28, %s2399_s1 }
 0x838   :  { %v2270_v53 = vpop.eup %2269 }
 0x839   :  { %v1372_v6 = vmul.f32 %v2270_v53, %v3079_v9  ;;  %v2272_v23 = vpop.eup %2271 }
 0x83a   :  { %v1368_v3 = vmul.f32 %v2272_v23, %v3059_v49  ;;  %v2365_v23 = vld [vmem:[%s3399_s0 + $0xa0] sm:$0xff] }
 0x83b   :  { %1443 = vrot.lane.b32.xlu0 %v1372_v6, %s2399_s1  ;;  %v2362_v6 = vld [vmem:[%s3399_s0 + $0x88] sm:$0xff] }
 0x83c   :  { %1423 = vrot.lane.b32.xlu1 %v2930_v52, %s2399_s1  ;;  %1447 = vrot.lane.b32.xlu2 %v1374_v16, %s2399_s1  ;;  %v1284_v52 = vsel %vm307_vm2, %v3067_v1, 0.0  ;;  %v2364_v16 = vld [vmem:[%s3399_s0 + $0x98] sm:$0xff] }
 0x843   :  { %1435 = vrot.lane.b32.xlu0 %v1368_v3, %s2399_s1  ;;  %v2366_v3 = vld [vmem:[%s3399_s0 + $0xa8] sm:$0xff] }
 0x844   :  { %1533 = vrot.lane.b32.xlu2 %v2482_v14, %s2399_s1  ;;  %v1275_v14 = vsel %vm307_vm2, %v3063_v51, 0.0 }
 0x866   :  { %1282 = vadd.xlane.f32.xlu1 %v1281_v24  ;;  %v2367_v24 = vld [vmem:[%s3399_s0 + $0xb0] sm:$0xff] }
 0x86d   :  { %1279 = vadd.xlane.f32.xlu2 %v1278_v33  ;;  %1285 = vadd.xlane.f32.xlu0 %v1284_v52  ;;  %v2368_v52 = vld [vmem:[%s3399_s0 + $0xb8] sm:$0xff] }
 0x86e   :  { %1273 = vadd.xlane.f32.xlu1 %v1272_v22 }
 0x875   :  { %1270 = vadd.xlane.f32.xlu2 %v1269_v11  ;;  %1276 = vadd.xlane.f32.xlu0 %v1275_v14 }
 0x876   :  { %1264 = vadd.xlane.f32.xlu1 %v1263_v17 }
 0x87d   :  { %1267 = vadd.xlane.f32.xlu0 %v1266_v18  ;;  %v1442_v26 = vpop.permute.xlu0 %1441 }
 0x87e   :  { %v1440_v63 = vpop.permute.xlu2 %1439 }
 0x88d   :  { %1375 = vrot.lane.b32.xlu2 %v2924_v0, %s2399_s1 }
 0x88e   :  { %v1434_v34 = vpop.permute.xlu2 %1433 }
 0x891   :  { %1488 = vrot.lane.b32.xlu0 %v2475_v12, %s2399_s1 }
 0x896   :  { %v1448_v25 = vpop.permute.xlu2 %1447 }
 0x897   :  { %2089 = vmatpush.xpose.msk.msra.mxu2 %vm307_vm2, %v1448_v25 }
 0x89e   :  { %v1446_v56 = vpop.permute.xlu1 %1445  ;;  %v1534_v12 = vpop.permute.xlu2 %1533 }
 0x89f   :  { %2090 = vmatpush.xpose.msk.msra.mxu2 %vm307_vm2, %v1446_v56 }
 0x8a6   :  { %v1438_v46 = vpop.permute.xlu1 %1437 }
 0x8ad   :  { %v1444_v19 = vpop.permute.xlu0 %1443 }
 0x8ae   :  { %2091 = vmatpush.xpose.msk.msra.mxu2 %vm307_vm2, %v1444_v19  ;;  %v1424_v37 = vpop.permute.xlu1 %1423 }
 0x8b2   :  { %2092 = vmatpush.xpose.msk.msra.mxu2 %vm307_vm2, %v1442_v26 }
 0x8b5   :  { %v1436_v0 = vpop.permute.xlu0 %1435 }
 0x8b6   :  { %2093 = vmatpush.xpose.msk.msra.mxu2 %vm307_vm2, %v1440_v63 }
 0x8ba   :  { %2094 = vmatpush.xpose.msk.msra.mxu2 %vm307_vm2, %v1438_v46 }
 0x8be   :  { %2095 = vmatpush.xpose.msk.msra.mxu2 %vm307_vm2, %v1436_v0 }
 0x8c2   :  { %2096 = vmatpush.xpose.msk.msra.mxu2 %vm307_vm2, %v1434_v34 }
 0x8c5   :  { %2097 = vmatmul.msk.f32.vlgmr.msra.gmra.mxu2 %vm307_vm2, %v1424_v37 }
 0x8c6   :  { %1551 = vmatpush.msrb.mxu2 %v1534_v12 }
 0x8cd   :  { %2106 = vmatmul.msk.f32.vlgmr.msrb.gmra.mxu2 %vm144_vm1, %v2353_v55 }
 0x8d5   :  { %2107 = vmatmul.msk.f32.gmra.mxu2 %vm144_vm1, %v2354_v29 }
 0x8d9   :  { %v1283_v36 = vpop.xlane.xlu1 %1282 }
 0x8dd   :  { %2108 = vmatmul.msk.f32.gmra.mxu2 %vm144_vm1, %v2355_v30 }
 0x8e0   :  { %v1286_v35 = vpop.xlane.xlu0 %1285  ;;  %v1280_v60 = vpop.xlane.xlu2 %1279 }
 0x8e1   :  { %2273 = vrcp.f32 %v1286_v35  ;;  %v1274_v38 = vpop.xlane.xlu1 %1273 }
 0x8e2   :  { %2275 = vrcp.f32 %v1283_v36 }
 0x8e3   :  { %2277 = vrcp.f32 %v1280_v60 }
 0x8e5   :  { %2109 = vmatmul.msk.f32.gmra.mxu2 %vm144_vm1, %v2356_v39 }
 0x8e7   :  { %v2274_v40 = vpop.eup %2273 }
 0x8e8   :  { %v1302_v8 = vmul.f32 %v2274_v40, %v3067_v1  ;;  %v1277_v59 = vpop.xlane.xlu0 %1276  ;;  %v2276_v41 = vpop.eup %2275 }
 0x8e9   :  { %2279 = vrcp.f32 %v1277_v59  ;;  %v1301_v45 = vmul.f32 %v2276_v41, %v3087_v20  ;;  %v2278_v44 = vpop.eup %2277  ;;  %v1271_v43 = vpop.xlane.xlu2 %1270 }
 0x8ea   :  { %2080 = vmatpush.xpose.msk.msra.mxu1 %vm307_vm2, %v1302_v8  ;;  %2281 = vrcp.f32 %v1274_v38  ;;  %v1300_v1 = vmul.f32 %v2278_v44, %v3079_v9  ;;  %v1265_v32 = vpop.xlane.xlu1 %1264 }
 0x8eb   :  { %2283 = vrcp.f32 %v1271_v43 }
 0x8ed   :  { %2110 = vmatmul.msk.f32.gmra.mxu2 %vm144_vm1, %v2357_v42 }
 0x8ee   :  { %2081 = vmatpush.xpose.msk.msra.mxu1 %vm307_vm2, %v1301_v45 }
 0x8ef   :  { %v2280_v47 = vpop.eup %2279 }
 0x8f0   :  { %v1268_v48 = vpop.xlane.xlu0 %1267  ;;  %v1299_v20 = vmul.f32 %v2280_v47, %v3063_v51  ;;  %v2282_v31 = vpop.eup %2281 }
 0x8f1   :  { %2285 = vrcp.f32 %v1268_v48  ;;  %v1298_v9 = vmul.f32 %v2282_v31, %v3081_v10  ;;  %v2284_v7 = vpop.eup %2283  ;;  %v2360_v10 = vld [vmem:[%s3399_s0 + $0xf8] sm:$0xff] }
 0x8f2   :  { %2082 = vmatpush.xpose.msk.msra.mxu1 %vm307_vm2, %v1300_v1  ;;  %2287 = vrcp.f32 %v1265_v32  ;;  %v1297_v58 = vmul.f32 %v2284_v7, %v3071_v57  ;;  %v1376_v57 = vpop.permute.xlu2 %1375 }
 0x8f5   :  { %2111 = vmatmul.msk.f32.gmra.mxu2 %vm144_vm1, %v2358_v50 }
 0x8f6   :  { %2083 = vmatpush.xpose.msk.msra.mxu1 %vm307_vm2, %v1299_v20 }
 0x8f7   :  { %v2286_v51 = vpop.eup %2285 }
 0x8f8   :  { %v1296_v28 = vmul.f32 %v2286_v51, %v3059_v49  ;;  %v2288_v61 = vpop.eup %2287  ;;  %v2361_v49 = vld [vmem:[%s3399_s0 + $0x80] sm:$0xff] }
 0x8f9   :  { %v1295_v21 = vmul.f32 %v2288_v61, %v3073_v15  ;;  %v2363_v15 = vld [vmem:[%s3399_s0 + $0x90] sm:$0xff] }
 0x8fa   :  { %2084 = vmatpush.xpose.msk.msra.mxu1 %vm307_vm2, %v1298_v9 }
 0x8fd   :  { %2112 = vmatmul.msk.f32.gmra.mxu2 %vm144_vm1, %v2359_v54 }
 0x8fe   :  { %2085 = vmatpush.xpose.msk.msra.mxu1 %vm307_vm2, %v1297_v58 }
 0x902   :  { %2086 = vmatpush.xpose.msk.msra.mxu1 %vm307_vm2, %v1296_v28 }
 0x903   :  { %v1489_v53 = vpop.permute.xlu0 %1488 }
 0x905   :  { %2113 = vmatmul.msk.f32.gmra.mxu2 %vm144_vm1, %v2360_v10 }
 0x906   :  { %2087 = vmatpush.xpose.msk.msra.mxu1 %vm307_vm2, %v1295_v21 }
 0x909   :  { %2088 = vmatmul.msk.f32.vlgmr.msra.gmra.mxu1 %vm307_vm2, %v1376_v57 }
 0x90a   :  { %1506 = vmatpush.msrb.mxu1 %v1489_v53 }
 0x911   :  { %2098 = vmatmul.msk.f32.vlgmr.msrb.gmra.mxu1 %vm144_vm1, %v2361_v49 }
 0x919   :  { %2099 = vmatmul.msk.f32.gmra.mxu1 %vm144_vm1, %v2362_v6 }
 0x921   :  { %2100 = vmatmul.msk.f32.gmra.mxu1 %vm144_vm1, %v2363_v15 }
 0x929   :  { %2101 = vmatmul.msk.f32.gmra.mxu1 %vm144_vm1, %v2364_v16 }
 0x931   :  { %2102 = vmatmul.msk.f32.gmra.mxu1 %vm144_vm1, %v2365_v23 }
 0x939   :  { %2103 = vmatmul.msk.f32.gmra.mxu1 %vm144_vm1, %v2366_v3 }
 0x941   :  { %2104 = vmatmul.msk.f32.gmra.mxu1 %vm144_vm1, %v2367_v24 }
 0x948   :  { %v3225_v33 = vpop.f32.mrf.mxu2 }
 0x949   :  { %2105 = vmatmul.msk.f32.gmra.mxu1 %vm144_vm1, %v2368_v52 }
 0x950   :  { %v1553_v22 = vpop.f32.mrf.mxu2 }
 0x958   :  { %v1556_v11 = vpop.f32.mrf.mxu2 }
 0x960   :  { %v1559_v14 = vpop.f32.mrf.mxu2 }
 0x961   :  { %1589 = vrot.lane.b32.xlu2 %v1559_v14, %s2399_s1 }
 0x968   :  { %v1562_v17 = vpop.f32.mrf.mxu2 }
 0x969   :  { %1591 = vrot.lane.b32.xlu1 %v1562_v17, %s2399_s1 }
 0x970   :  { %v1565_v18 = vpop.f32.mrf.mxu2 }
 0x971   :  { %1593 = vrot.lane.b32.xlu0 %v1565_v18, %s2399_s1 }
 0x978   :  { %v1568_v63 = vpop.f32.mrf.mxu2 }
 0x979   :  { %1595 = vrot.lane.b32.xlu2 %v1568_v63, %s2399_s1 }
 0x980   :  { %v1571_v34 = vpop.f32.mrf.mxu2 }
 0x981   :  { %1597 = vrot.lane.b32.xlu0 %v1571_v34, %s2399_s1 }
 0x986   :  { %v3239_v56 = vpop.f32.mrf.mxu1 }
 0x988   :  { %v1574_v25 = vpop.f32.mrf.mxu2 }
 0x989   :  { %1587 = vrot.lane.b32.xlu0 %v1556_v11, %s2399_s1  ;;  %1599 = vrot.lane.b32.xlu1 %v1574_v25, %s2399_s1 }
 0x98e   :  { %v1508_v26 = vpop.f32.mrf.mxu1 }
 0x991   :  { %1585 = vrot.lane.b32.xlu1 %v1553_v22, %s2399_s1 }
 0x996   :  { %v1511_v19 = vpop.f32.mrf.mxu1 }
 0x99e   :  { %v1514_v46 = vpop.f32.mrf.mxu1 }
 0x9a6   :  { %v1517_v55 = vpop.f32.mrf.mxu1 }
 0x9ae   :  { %v1520_v29 = vpop.f32.mrf.mxu1 }
 0x9b6   :  { %v1523_v30 = vpop.f32.mrf.mxu1 }
 0x9bb   :  { %v1590_v0 = vpop.permute.xlu2 %1589 }
 0x9bc   :  { %v1611_v12 = vsel %vm307_vm2, %v1514_v46, %v1590_v0 }
 0x9bd   :  { %v1619_v37 = vmul.f32 0.35355338, %v1611_v12 }
 0x9be   :  { %v1526_v42 = vpop.f32.mrf.mxu1 }
 0x9bf   :  { %1629 = vmax.xlane.f32.xlu1 %v1619_v37 }
 0x9c6   :  { %v1529_v50 = vpop.f32.mrf.mxu1 }
 0x9d3   :  { %v1596_v35 = vpop.permute.xlu2 %1595 }
 0x9d4   :  { %v1614_v36 = vsel %vm307_vm2, %v1523_v30, %v1596_v35 }
 0x9d5   :  { %v1622_v60 = vmul.f32 0.35355338, %v1614_v36 }
 0x9d7   :  { %1635 = vmax.xlane.f32.xlu1 %v1622_v60 }
 0x9db   :  { %v1592_v40 = vpop.permute.xlu1 %1591 }
 0x9dc   :  { %v1612_v31 = vsel %vm307_vm2, %v1517_v55, %v1592_v40 }
 0x9dd   :  { %v1620_v9 = vmul.f32 0.35355338, %v1612_v31 }
 0x9e3   :  { %v1594_v39 = vpop.permute.xlu0 %1593 }
 0x9e4   :  { %v1613_v44 = vsel %vm307_vm2, %v1520_v29, %v1594_v39 }
 0x9e5   :  { %v1621_v47 = vmul.f32 0.35355338, %v1613_v44 }
 0x9f3   :  { %v1598_v8 = vpop.permute.xlu0 %1597 }
 0x9f4   :  { %v1615_v7 = vsel %vm307_vm2, %v1526_v42, %v1598_v8 }
 0x9f5   :  { %v1623_v54 = vmul.f32 0.35355338, %v1615_v7 }
 0x9fb   :  { %v1588_v59 = vpop.permute.xlu0 %1587  ;;  %v1600_v41 = vpop.permute.xlu1 %1599 }
 0x9fc   :  { %v1610_v38 = vsel %vm307_vm2, %v1511_v19, %v1588_v59  ;;  %v1616_v20 = vsel %vm307_vm2, %v1529_v50, %v1600_v41 }
 0x9fd   :  { %v1618_v45 = vmul.f32 0.35355338, %v1610_v38  ;;  %v1624_v32 = vmul.f32 0.35355338, %v1616_v20 }
 0x9ff   :  { %1627 = vmax.xlane.f32.xlu2 %v1618_v45 }
 0xa03   :  { %v1586_v43 = vpop.permute.xlu1 %1585 }
 0xa04   :  { %v1609_v1 = vsel %vm307_vm2, %v1508_v26, %v1586_v43 }
 0xa05   :  { %v1617_v48 = vmul.f32 0.35355338, %v1609_v1 }
 0xa07   :  { %1633 = vmax.xlane.f32.xlu2 %v1621_v47  ;;  %1625 = vmax.xlane.f32.xlu0 %v1617_v48 }
 0xa0f   :  { %1639 = vmax.xlane.f32.xlu2 %v1624_v32  ;;  %1631 = vmax.xlane.f32.xlu0 %v1620_v9 }
 0xa17   :  { %1637 = vmax.xlane.f32.xlu0 %v1623_v54 }
 0xa32   :  { %v1630_v58 = vpop.xlane.xlu1 %1629 }
 0xa33   :  { %v1643_v51 = vsub.f32 %v1619_v37, %v1630_v58 }
 0xa35   :  { %v1653_v28 = vmul.f32 1.442695, %v1643_v51 }
 0xa37   :  { %2289 = vpow2.f32 %v1653_v28 }
 0xa3d   :  { %v3249_v61 = vpop.eup %2289 }
 0xa3e   :  { %1717 = vrot.lane.b32.xlu0 %v3249_v61, %s2399_s1 }
 0xa4a   :  { %v1636_v10 = vpop.xlane.xlu1 %1635 }
 0xa4b   :  { %v1646_v21 = vsub.f32 %v1622_v60, %v1636_v10 }
 0xa4d   :  { %v1659_v53 = vmul.f32 1.442695, %v1646_v21 }
 0xa4f   :  { %2291 = vpow2.f32 %v1659_v53 }
 0xa55   :  { %v3253_v57 = vpop.eup %2291 }
 0xa56   :  { %1723 = vrot.lane.b32.xlu0 %v3253_v57, %s2399_s1  ;;  %v1680_v50 = vsel %vm307_vm2, %v3253_v57, 0.0 }
 0xa72   :  { %v1628_v49 = vpop.xlane.xlu2 %1627 }
 0xa73   :  { %v1642_v18 = vsub.f32 %v1618_v45, %v1628_v49 }
 0xa75   :  { %v1651_v63 = vmul.f32 1.442695, %v1642_v18 }
 0xa7a   :  { %v1634_v6 = vpop.xlane.xlu2 %1633  ;;  %v1626_v15 = vpop.xlane.xlu0 %1625 }
 0xa7b   :  { %v1645_v16 = vsub.f32 %v1621_v47, %v1634_v6  ;;  %v1641_v0 = vsub.f32 %v1617_v48, %v1626_v15  ;;  %v2400_v15 = vmov 0  }
 0xa7c   :  { %2144 = vset.pattern.permute.xlu2 %v2400_v15  ;;  %2143 = vset.pattern.permute.xlu1 %v2400_v15 }
 0xa7d   :  { %v1657_v23 = vmul.f32 1.442695, %v1645_v16  ;;  %v1649_v37 = vmul.f32 1.442695, %v1641_v0  ;;  %2142 = vset.pattern.permute.xlu0 %v2400_v15  ;;  %v2370_v15 = vld [vmem:[%s3402_s3 + $0x8] sm:$0xff] }
 0xa7f   :  { %2293 = vpow2.f32 %v1657_v23 }
 0xa82   :  { %v1640_v3 = vpop.xlane.xlu2 %1639  ;;  %v1632_v24 = vpop.xlane.xlu0 %1631 }
 0xa83   :  { %v1648_v52 = vsub.f32 %v1624_v32, %v1640_v3  ;;  %v1644_v22 = vsub.f32 %v1620_v9, %v1632_v24  ;;  %v1671_v9 = vsel %vm307_vm2, %v3249_v61, 0.0 }
 0xa85   :  { %v3257_v11 = vpop.eup %2293  ;;  %v1663_v14 = vmul.f32 1.442695, %v1648_v52  ;;  %v1655_v17 = vmul.f32 1.442695, %v1644_v22 }
 0xa86   :  { %1721 = vrot.lane.b32.xlu1 %v3257_v11, %s2399_s1  ;;  %v1677_v38 = vsel %vm307_vm2, %v3257_v11, 0.0 }
 0xa87   :  { %2295 = vpow2.f32 %v1663_v14 }
 0xa88   :  { %2297 = vpow2.f32 %v1655_v17 }
 0xa89   :  { %2299 = vpow2.f32 %v1651_v63  ;;  %v105_v63 = vld [vmem:[%s3403_s4 + $0x10] sm:$0xff] }
 0xa8a   :  { %v1638_v34 = vpop.xlane.xlu0 %1637 }
 0xa8b   :  { %v1647_v25 = vsub.f32 %v1623_v54, %v1638_v34 }
 0xa8d   :  { %v3261_v26 = vpop.eup %2295  ;;  %v1661_v19 = vmul.f32 1.442695, %v1647_v25 }
 0xa8e   :  { %v3263_v46 = vpop.eup %2297  ;;  %1727 = vrot.lane.b32.xlu1 %v3261_v26, %s2399_s1  ;;  %v1686_v30 = vsel %vm307_vm2, %v3261_v26, 0.0 }
 0xa8f   :  { %2301 = vpow2.f32 %v1661_v19  ;;  %1719 = vrot.lane.b32.xlu2 %v3263_v46, %s2399_s1  ;;  %v3269_v12 = vpop.eup %2299  ;;  %v1674_v31 = vsel %vm307_vm2, %v3263_v46, 0.0 }
 0xa90   :  { %2303 = vpow2.f32 %v1649_v37  ;;  %v1668_v7 = vsel %vm307_vm2, %v3269_v12, 0.0 }
 0xa95   :  { %v3271_v55 = vpop.eup %2301 }
 0xa96   :  { %1715 = vrot.lane.b32.xlu1 %v3269_v12, %s2399_s1  ;;  %v3277_v29 = vpop.eup %2303  ;;  %v1683_v32 = vsel %vm307_vm2, %v3271_v55, 0.0 }
 0xa97   :  { %1725 = vrot.lane.b32.xlu2 %v3271_v55, %s2399_s1  ;;  %v1665_v54 = vsel %vm307_vm2, %v3277_v29, 0.0 }
 0xa9f   :  { %1713 = vrot.lane.b32.xlu2 %v3277_v29, %s2399_s1 }
 0xab0   :  { %v1718_v35 = vpop.permute.xlu0 %1717 }
 0xab1   :  { %v1743_v36 = vsel %vm307_vm2, %v1718_v35, 0.0 }
 0xac0   :  { %1687 = vadd.xlane.f32.xlu1 %v1686_v30 }
 0xac8   :  { %1744 = vadd.xlane.f32.xlu1 %v1743_v36  ;;  %v1724_v44 = vpop.permute.xlu0 %1723 }
 0xac9   :  { %v1752_v47 = vsel %vm307_vm2, %v1724_v44, 0.0 }
 0xae9   :  { %v1720_v60 = vpop.permute.xlu2 %1719 }
 0xaea   :  { %v1746_v45 = vsel %vm307_vm2, %v1720_v60, 0.0 }
 0xaf1   :  { %v1726_v39 = vpop.permute.xlu2 %1725 }
 0xaf2   :  { %v1755_v40 = vsel %vm307_vm2, %v1726_v39, 0.0 }
 0xaf3   :  { %1756 = vadd.xlane.f32.xlu1 %v1755_v40 }
 0xaf8   :  { %v1722_v8 = vpop.permute.xlu1 %1721 }
 0xaf9   :  { %v1714_v59 = vpop.permute.xlu2 %1713  ;;  %v1749_v48 = vsel %vm307_vm2, %v1722_v8, 0.0 }
 0xafa   :  { %v1737_v41 = vsel %vm307_vm2, %v1714_v59, 0.0 }
 0xafb   :  { %1738 = vadd.xlane.f32.xlu2 %v1737_v41  ;;  %1678 = vadd.xlane.f32.xlu1 %v1677_v38 }
 0xb00   :  { %v1728_v42 = vpop.permute.xlu1 %1727 }
 0xb01   :  { %v1758_v20 = vsel %vm307_vm2, %v1728_v42, 0.0 }
 0xb03   :  { %1747 = vadd.xlane.f32.xlu2 %v1746_v45 }
 0xb08   :  { %v1716_v43 = vpop.permute.xlu1 %1715 }
 0xb09   :  { %v1740_v1 = vsel %vm307_vm2, %v1716_v43, 0.0 }
 0xb0a   :  { %1741 = vadd.xlane.f32.xlu0 %v1740_v1 }
 0xb0b   :  { %1753 = vadd.xlane.f32.xlu2 %v1752_v47 }
 0xb12   :  { %1750 = vadd.xlane.f32.xlu0 %v1749_v48 }
 0xb13   :  { %1681 = vadd.xlane.f32.xlu2 %v1680_v50 }
 0xb1a   :  { %1759 = vadd.xlane.f32.xlu0 %v1758_v20 }
 0xb1b   :  { %1675 = vadd.xlane.f32.xlu2 %v1674_v31 }
 0xb22   :  { %1684 = vadd.xlane.f32.xlu0 %v1683_v32 }
 0xb23   :  { %1672 = vadd.xlane.f32.xlu2 %v1671_v9 }
 0xb2b   :  { %1669 = vadd.xlane.f32.xlu2 %v1668_v7 }
 0xb33   :  { %1666 = vadd.xlane.f32.xlu2 %v1665_v54  ;;  %v1688_v58 = vpop.xlane.xlu1 %1687 }
 0xb34   :  { %2305 = vrcp.f32 %v1688_v58 }
 0xb3a   :  { %v2306_v51 = vpop.eup %2305 }
 0xb3b   :  { %v1704_v28 = vmul.f32 %v2306_v51, %v3261_v26  ;;  %v1745_v10 = vpop.xlane.xlu1 %1744 }
 0xb3d   :  { %2114 = vmatpush.xpose.msk.msra.mxu3 %vm307_vm2, %v1704_v28 }
 0xb66   :  { %v1757_v21 = vpop.xlane.xlu1 %1756 }
 0xb67   :  { %2307 = vrcp.f32 %v1757_v21 }
 0xb6d   :  { %v2308_v53 = vpop.eup %2307 }
 0xb6e   :  { %v3307_v49 = vpop.xlane.xlu2 %1738  ;;  %v1775_v6 = vmul.f32 %v2308_v53, %v3271_v55  ;;  %v1679_v35 = vpop.xlane.xlu1 %1678 }
 0xb70   :  { %1847 = vrot.lane.b32.xlu1 %v1775_v6, %s2399_s1  ;;  %v2369_v6 = vld [vmem:[%s3402_s3] sm:$0xff] }
 0xb76   :  { %v1748_v16 = vpop.xlane.xlu2 %1747 }
 0xb77   :  { %2309 = vrcp.f32 %v1748_v16  ;;  %v2371_v16 = vld [vmem:[%s3402_s3 + $0x10] sm:$0xff] }
 0xb7d   :  { %v2310_v23 = vpop.eup %2309  ;;  %v1742_v3 = vpop.xlane.xlu0 %1741 }
 0xb7e   :  { %v1754_v24 = vpop.xlane.xlu2 %1753  ;;  %2311 = vrcp.f32 %v1742_v3  ;;  %v1772_v52 = vmul.f32 %v2310_v23, %v3263_v46 }
 0xb80   :  { %1841 = vrot.lane.b32.xlu1 %v1772_v52, %s2399_s1 }
 0xb84   :  { %v2312_v22 = vpop.eup %2311 }
 0xb85   :  { %v1751_v14 = vpop.xlane.xlu0 %1750  ;;  %v1770_v17 = vmul.f32 %v2312_v22, %v3269_v12 }
 0xb86   :  { %v1682_v18 = vpop.xlane.xlu2 %1681 }
 0xb87   :  { %1837 = vrot.lane.b32.xlu2 %v1770_v17, %s2399_s1 }
 0xb88   :  { %1777 = vrot.lane.b32.xlu1 %v2936_v27, %s2399_s1  ;;  %v104_v27 = vld [vmem:[%s3403_s4 + $0x8] sm:$0xff] }
 0xb8d   :  { %v1760_v34 = vpop.xlane.xlu0 %1759 }
 0xb8e   :  { %v1676_v25 = vpop.xlane.xlu2 %1675  ;;  %2313 = vrcp.f32 %v1760_v34 }
 0xb8f   :  { %119 = vperm.xlu2 %2144, %v105_v63   ;;  %2315 = vrcp.f32 %v1754_v24 }
 0xb90   :  { %1825 = vrot.lane.b32.xlu1 %v2951_v13, %s2399_s1 }
 0xb94   :  { %v2314_v19 = vpop.eup %2313 }
 0xb95   :  { %v1685_v0 = vpop.xlane.xlu0 %1684  ;;  %v1776_v37 = vmul.f32 %v2314_v19, %v3261_v26  ;;  %v2316_v36 = vpop.eup %2315  ;;  %v106_v26 = vld [vmem:[%s3403_s4 + $0x18] sm:$0xff] }
 0xb96   :  { %v1673_v30 = vpop.xlane.xlu2 %1672  ;;  %2317 = vrcp.f32 %v1685_v0  ;;  %v1774_v13 = vmul.f32 %v2316_v36, %v3253_v57 }
 0xb97   :  { %1849 = vrot.lane.b32.xlu0 %v1776_v37, %s2399_s1  ;;  %2319 = vrcp.f32 %v1682_v18 }
 0xb98   :  { %114 = vperm.xlu1 %2143, %v104_v27   ;;  %2321 = vrcp.f32 %v1679_v35 }
 0xb99   :  { %2323 = vrcp.f32 %v1751_v14 }
 0xb9a   :  { %2325 = vrcp.f32 %v1676_v25 }
 0xb9b   :  { %2327 = vrcp.f32 %v1745_v10 }
 0xb9c   :  { %v2318_v60 = vpop.eup %2317  ;;  %2329 = vrcp.f32 %v1673_v30 }
 0xb9d   :  { %v1703_v39 = vmul.f32 %v2318_v60, %v3271_v55  ;;  %v2320_v40 = vpop.eup %2319 }
 0xb9e   :  { %v1670_v8 = vpop.xlane.xlu2 %1669  ;;  %v2322_v59 = vpop.eup %2321  ;;  %v1702_v41 = vmul.f32 %v2320_v40, %v3253_v57 }
 0xb9f   :  { %1845 = vrot.lane.b32.xlu0 %v1774_v13, %s2399_s1  ;;  %2115 = vmatpush.xpose.msk.msra.mxu3 %vm307_vm2, %v1703_v39  ;;  %v2324_v38 = vpop.eup %2323  ;;  %v1701_v42 = vmul.f32 %v2322_v59, %v3257_v11  ;;  %2331 = vrcp.f32 %v1670_v8 }
 0xba0   :  { %124 = vperm.xlu1 %2143, %v106_v26   ;;  %v1773_v55 = vmul.f32 %v2324_v38, %v3257_v11  ;;  %v2326_v45 = vpop.eup %2325  ;;  %2333 = vrcp.f32 %v3307_v49 }
 0xba1   :  { %v2328_v44 = vpop.eup %2327  ;;  %v1700_v1 = vmul.f32 %v2326_v45, %v3263_v46 }
 0xba2   :  { %v2330_v57 = vpop.eup %2329  ;;  %v1771_v47 = vmul.f32 %v2328_v44, %v3249_v61 }
 0xba3   :  { %2116 = vmatpush.xpose.msk.msra.mxu3 %vm307_vm2, %v1702_v41  ;;  %v1699_v11 = vmul.f32 %v2330_v57, %v3249_v61  ;;  %v103_v61 = vld [vmem:[%s3403_s4] sm:$0xff] }
 0xba5   :  { %v2332_v48 = vpop.eup %2331 }
 0xba6   :  { %v1667_v43 = vpop.xlane.xlu2 %1666  ;;  %v2334_v50 = vpop.eup %2333  ;;  %v1698_v20 = vmul.f32 %v2332_v48, %v3269_v12 }
 0xba7   :  { %1843 = vrot.lane.b32.xlu0 %v1773_v55, %s2399_s1  ;;  %2117 = vmatpush.xpose.msk.msra.mxu3 %vm307_vm2, %v1701_v42  ;;  %2335 = vrcp.f32 %v1667_v43  ;;  %v1769_v46 = vmul.f32 %v2334_v50, %v3277_v29 }
 0xbab   :  { %2118 = vmatpush.xpose.msk.msra.mxu3 %vm307_vm2, %v1700_v1 }
 0xbad   :  { %v2336_v31 = vpop.eup %2335 }
 0xbae   :  { %v1697_v32 = vmul.f32 %v2336_v31, %v3277_v29 }
 0xbaf   :  { %1839 = vrot.lane.b32.xlu0 %v1771_v47, %s2399_s1  ;;  %2119 = vmatpush.xpose.msk.msra.mxu3 %vm307_vm2, %v1699_v11 }
 0xbb3   :  { %2120 = vmatpush.xpose.msk.msra.mxu3 %vm307_vm2, %v1698_v20 }
 0xbb7   :  { %1835 = vrot.lane.b32.xlu0 %v1769_v46, %s2399_s1  ;;  %2121 = vmatpush.xpose.msk.msra.mxu3 %vm307_vm2, %v1697_v32 }
 0xbbf   :  { %109 = vperm.xlu0 %2142, %v103_v61  }
 0xbe1   :  { %v1838_v28 = vpop.permute.xlu2 %1837 }
 0xbe2   :  { %v1848_v9 = vpop.permute.xlu1 %1847 }
 0xbe9   :  { %v120_v14 = vpop.permute.xlu2 %119 }
 0xbea   :  { %v1080_v36 = vadd.f32 %v3039_v2, %v120_v14 }
 0xbf2   :  { %v1842_v7 = vpop.permute.xlu1 %1841 }
 0xbfa   :  { %v1778_v54 = vpop.permute.xlu1 %1777 }
 0xbfb   :  { %2122 = vmatmul.msk.f32.vlgmr.msra.gmra.mxu3 %vm307_vm2, %v1778_v54 }
 0xc02   :  { %v1826_v21 = vpop.permute.xlu1 %1825 }
 0xc09   :  { %v1850_v12 = vpop.permute.xlu0 %1849 }
 0xc0a   :  { %2123 = vmatpush.xpose.msk.msrb.mxu0 %vm307_vm2, %v1850_v12  ;;  %v115_v24 = vpop.permute.xlu1 %114 }
 0xc0b   :  { %v1077_v19 = vadd.f32 %v3037_v5, %v115_v24 }
 0xc0e   :  { %2124 = vmatpush.xpose.msk.msrb.mxu0 %vm307_vm2, %v1848_v9 }
 0xc11   :  { %v1846_v29 = vpop.permute.xlu0 %1845 }
 0xc12   :  { %2125 = vmatpush.xpose.msk.msrb.mxu0 %vm307_vm2, %v1846_v29  ;;  %v125_v63 = vpop.permute.xlu1 %124 }
 0xc13   :  { %v1083_v5 = vadd.f32 %v3041_v4, %v125_v63 }
 0xc19   :  { %v1844_v58 = vpop.permute.xlu0 %1843 }
 0xc1a   :  { %2126 = vmatpush.xpose.msk.msrb.mxu0 %vm307_vm2, %v1844_v58 }
 0xc1e   :  { %2127 = vmatpush.xpose.msk.msrb.mxu0 %vm307_vm2, %v1842_v7 }
 0xc21   :  { %v1840_v51 = vpop.permute.xlu0 %1839 }
 0xc22   :  { %2128 = vmatpush.xpose.msk.msrb.mxu0 %vm307_vm2, %v1840_v51 }
 0xc26   :  { %2129 = vmatpush.xpose.msk.msrb.mxu0 %vm307_vm2, %v1838_v28 }
 0xc29   :  { %v1836_v10 = vpop.permute.xlu0 %1835 }
 0xc2a   :  { %2130 = vmatpush.xpose.msk.msrb.mxu0 %vm307_vm2, %v1836_v10 }
 0xc2d   :  { %2131 = vmatmul.msk.f32.vlgmr.msrb.gmra.mxu0 %vm307_vm2, %v1826_v21 }
 0xc7e   :  { %v1822_v49 = vpop.f32.mrf.mxu3 }
 0xcaa   :  { %v1886_v53 = vpop.f32.mrf.mxu0 }
 0xcab   :  { %1901 = vmatpush.msrb.mxu3 %v1886_v53 }
 0xcad   :  { %1902 = vmatpush.msrb.mxu3 %v1822_v49 }
 0xcaf   :  { %1903 = vmatpush.msrb.mxu3 %v3225_v33  ;;  %v2372_v33 = vld [vmem:[%s3402_s3 + $0x18] sm:$0xff]  ;;  %s2401_s3 = smov [#allocation2]  }
 0xcb1   :  { %1904 = vmatpush.msrb.mxu3 %v3239_v56  ;;  %v110_v56 = vpop.permute.xlu0 %109 }
 0xcb2   :  { %2132 = vmatmul.msk.f32.vlgmr.msrb.gmra.mxu3 %vm33_vm0, %v2369_v6  ;;  %v1074_v27 = vadd.f32 %v3035_v62, %v110_v56 }
 0xcba   :  { %2133 = vmatmul.msk.f32.gmra.mxu3 %vm33_vm0, %v2370_v15 }
 0xcc2   :  { %2134 = vmatmul.msk.f32.gmra.mxu3 %vm33_vm0, %v2371_v16 }
 0xcca   :  { %2135 = vmatmul.msk.f32.gmra.mxu3 %vm33_vm0, %v2372_v33 }
 0xd35   :  { %v1906_v23 = vpop.f32.mrf.mxu3 }
 0xd36   :  { %v1907_v3 = vadd.f32 %v1906_v23, %v110_v56 }
 0xd38   :  { %1922 = vrot.lane.b32.xlu0 %v1907_v3, %s2399_s1 }
 0xd3d   :  { %v1909_v52 = vpop.f32.mrf.mxu3 }
 0xd3e   :  { %v1910_v22 = vadd.f32 %v1909_v52, %v115_v24 }
 0xd40   :  { %1924 = vrot.lane.b32.xlu2 %v1910_v22, %s2399_s1 }
 0xd45   :  { %v1912_v17 = vpop.f32.mrf.mxu3 }
 0xd46   :  { %v1913_v18 = vadd.f32 %v1912_v17, %v120_v14 }
 0xd48   :  { %1926 = vrot.lane.b32.xlu1 %v1913_v18, %s2399_s1 }
 0xd4d   :  { %v1915_v34 = vpop.f32.mrf.mxu3 }
 0xd4e   :  { %v1916_v25 = vadd.f32 %v1915_v34, %v125_v63 }
 0xd50   :  { %1928 = vrot.lane.b32.xlu0 %v1916_v25, %s2399_s1  ;;  %s1946_s1 = sshll.u32 %s2401_s3, 4  ;;  %s1947_s1 = int_to_ptr.vmem [resolvable:$true] %s1946_s1 }
 0xd9a   :  { %v1925_v0 = vpop.permute.xlu2 %1924 }
 0xd9b   :  { %v1935_v37 = vsel %vm307_vm2, %v1077_v19, %v1925_v0 }
 0xd9c   :  { %1939 = vst [vmem:[#allocation2 + $0x8] sm:$0xff] %v1935_v37 }
 0xdaa   :  { %v1923_v30 = vpop.permute.xlu0 %1922 }
 0xdab   :  { %v1934_v35 = vsel %vm307_vm2, %v1074_v27, %v1923_v30 }
 0xdac   :  { %1938 = vst [vmem:[#allocation2] sm:$0xff] %v1934_v35 }
 0xdba   :  { %v1927_v60 = vpop.permute.xlu1 %1926 }
 0xdbb   :  { %v1936_v13 = vsel %vm307_vm2, %v1080_v36, %v1927_v60 }
 0xdbc   :  { %1940 = vst [vmem:[#allocation2 + $0x10] sm:$0xff] %v1936_v13 }
 0xdc2   :  { %v1929_v62 = vpop.permute.xlu0 %1928 }
 0xdc3   :  { %v1937_v39 = vsel %vm307_vm2, %v1083_v5, %v1929_v62 }
 0xdc4   :  { %1941 = vst [vmem:[#allocation2 + $0x18] sm:$0xff] %v1937_v39 }
 0xdc5   :  { %1954 = dma.vmem_to_hbm [thread:$0]  %s1947_s1, 512, %s1949_s13, [#allocation3], %s2402_s14, %s2402_s14, %s2403_s15  }
 0xdc6   :  { %2397 = dma.done.wait [#allocation3], 512  }
 0xdc7   :  { %2398 = vsyncadd [#allocation3], 4294966784 }
 0xdc8   :  { %1959 = vsyncpa [#allocation3], 1 }

</bundles_post_ra>
